<compile_context>
chip_gen: v7x
topology: tpu7x:2x2x1
jax: 0.10.0
libtpu: 0.0.40
codegen_flags: <defaults>
</compile_context>

<pallas_src>
import functools

import numpy as np
import jax
import jax.numpy as jnp
from jax.experimental import pallas as pl
from jax.experimental.pallas import tpu as pltpu


# ----------------------------------------------------------------------------
# Single fused Pallas kernel
# ----------------------------------------------------------------------------
def _ccn_fused_kernel(x_ref, w1_ref, w2_ref, vh_ref, wo_ref, c_ref, o_ref, *,
                      n, cin, h, w, cout1, cout2, hidden, n_out,
                      slope1, slope2):
    """Whole CCN forward.  All operands are full arrays resident in VMEM.

    Activation row space: r = b*(cin*h) + c*h + i  (image plane stride = cin*h).
    After the conv-1 channel fold only rows with c == 0 carry valid data; pools
    keep rows/lanes uncompacted (valid data at strided positions, garbage rows
    and lanes are finite and never read downstream)."""
    f32 = jnp.float32
    bf16 = jnp.bfloat16

    rows = n * cin * h           # 96  : packed row count
    plane = cin * h              # 48  : rows per image
    l1 = w * cout1               # 128 : conv1 output lanes (j*cout1 + co)
    w2sp = w // 2                # 8   : conv2 spatial width
    l2 = w2sp * cout2            # 128 : conv2 output lanes (j*cout2 + co)
    h3 = h // 4                  # 4   : spatial rows after both pools
    rs2 = 2                      # row stride per spatial step after pool 1
    rs3 = 4                      # row stride per spatial step after pool 2
    pad_out = wo_ref.shape[1]

    def act(v, slope):
        if slope == 0.0:
            return jnp.maximum(v, 0.0)                   # ReLU
        return jnp.where(v >= 0, v, slope * v)           # LeakyReLU

    # ---- packed per-lane constants (single DMA, 128-aligned static slices) --
    o0 = 0
    sh1 = c_ref[:, o0:o0 + l1]; o0 += l1                 # conv1 bias*scale+shift
    sh2 = c_ref[:, o0:o0 + l2]; o0 += l2                 # conv2 bias
    b1 = c_ref[:, o0:o0 + hidden]; o0 += hidden
    alpha = c_ref[:, o0:o0 + hidden]; o0 += hidden
    b2 = c_ref[:, o0:o0 + pad_out]

    # ---- image-boundary masks from iota (h is a power of two) ---------------
    ri_w = jax.lax.broadcasted_iota(jnp.int32, (rows, w), 0)
    m1_top = (jnp.bitwise_and(ri_w, h - 1) != 0).astype(f32)
    m1_bot = (jnp.bitwise_and(ri_w, h - 1) != (h - 1)).astype(f32)
    ri_l = jax.lax.broadcasted_iota(jnp.int32, (rows, l1), 0)
    m2_top = (jnp.bitwise_and(ri_l, h - 1) >= rs2).astype(f32)
    m2_bot = (jnp.bitwise_and(ri_l, h - 1) < (h - rs2)).astype(f32)

    # ---- stage 0: NCHW view -> packed (rows, W) plane stack (aligned concat)
    x0 = jnp.concatenate([x_ref[k] for k in range(n * cin)], axis=0)  # (96, 16)

    # ======================= layer 1: Conv3x3 + BN + ReLU ====================
    xu = (pltpu.roll(x0, 1, axis=0) * m1_top).astype(bf16)            # row i-1
    xm = x0.astype(bf16)                                              # row i
    xd = (pltpu.roll(x0, rows - 1, axis=0) * m1_bot).astype(bf16)     # row i+1
    # one (w, cin*l1) weight block per kernel row; the three dots are
    # independent and stream back-to-back through the MXU.
    y1w = jnp.dot(xu, w1_ref[0:w, :], preferred_element_type=f32)
    y1w = y1w + jnp.dot(xm, w1_ref[w:2 * w, :], preferred_element_type=f32)
    y1w = y1w + jnp.dot(xd, w1_ref[2 * w:3 * w, :], preferred_element_type=f32)
    # fold input channels (they live `h` rows apart in the packed row space)
    y1 = y1w[:, 0:l1]
    for c in range(1, cin):
        y1 = y1 + pltpu.roll(y1w[:, c * l1:(c + 1) * l1], rows - c * h, axis=0)
    y1 = act(y1 + sh1, slope1)                                        # (96, 128)

    # MaxPool 2x2 — pairwise max via rolls; stay uncompacted (valid @ even i,
    # even j lanes); the column selection is folded into w2 (zero rows).
    y1 = jnp.maximum(y1, pltpu.roll(y1, rows - 1, axis=0))
    c1 = jnp.maximum(y1, pltpu.roll(y1, l1 - cout1, axis=1))

    # ======================= layer 2: Conv3x3 + LeakyReLU ====================
    c1u = (pltpu.roll(c1, rs2, axis=0) * m2_top).astype(bf16)
    c1m = c1.astype(bf16)
    c1d = (pltpu.roll(c1, rows - rs2, axis=0) * m2_bot).astype(bf16)
    y2 = jnp.dot(c1u, w2_ref[0:l1, :], preferred_element_type=f32)
    y2 = y2 + jnp.dot(c1m, w2_ref[l1:2 * l1, :], preferred_element_type=f32)
    y2 = y2 + jnp.dot(c1d, w2_ref[2 * l1:3 * l1, :], preferred_element_type=f32)
    y2 = act(y2 + sh2, slope2)                                        # (96, 128)

    # MaxPool 2x2 (uncompacted; valid @ rows b*plane + 4*i3, lanes 2*j3*cout2+co)
    y2 = jnp.maximum(y2, pltpu.roll(y2, rows - rs2, axis=0))
    c2 = jnp.maximum(y2, pltpu.roll(y2, l2 - cout2, axis=1)).astype(bf16)

    # ============== head: Linear -> Dropout(id) -> PReLU -> Linear ===========
    # NCHW flatten + Linear1 folded into vh (zero rows for never-valid lanes);
    # the sum over spatial rows i3 is a lane-block slice + sublane roll fold.
    zw = jnp.dot(c2, vh_ref[...], preferred_element_type=f32)         # (96, h3*hidden)
    hcur = zw[:, 0:hidden]
    for i3 in range(1, h3):
        hcur = hcur + pltpu.roll(zw[:, i3 * hidden:(i3 + 1) * hidden],
                                 rows - rs3 * i3, axis=0)
    hcur = hcur + b1
    hcur = jnp.where(hcur >= 0, hcur, alpha * hcur)                   # PReLU
    out = jnp.dot(hcur.astype(bf16), wo_ref[...],
                  preferred_element_type=f32) + b2                    # (96, pad_out)

    # valid head rows are b*plane (i3 == 0 rows); two masked row stores
    for b in range(n):
        r = b * plane
        o_ref[b:b + 1, :] = out[r:r + 1, 0:n_out].astype(o_ref.dtype)


def ccn_forward(x_nchw, prepped):
    m = prepped["meta"]
    nb, cin, hh, ww = x_nchw.shape
    # prepared constants bake (batch, channels, H, W) — guard against misuse
    assert (nb, cin, hh, ww) == (m["n"], m["cin"], m["h"], m["w"]), \
        "input shape does not match the shape the constants were prepared for"
    # leading-dim merge only (layout-preserving, no transpose / copy launch)
    x3d = x_nchw.reshape(nb * cin, hh, ww)
    kern = functools.partial(_ccn_fused_kernel, **m)
    return pl.pallas_call(
        kern,
        out_shape=jax.ShapeDtypeStruct((nb, m["n_out"]), jnp.float32),
    )(x3d, prepped["w1"], prepped["w2"], prepped["vh"], prepped["wo"],
      prepped["consts"])


# ----------------------------------------------------------------------------
# One-time parameter preparation (Toeplitz / folded weights, packed constants)
# ----------------------------------------------------------------------------
def prepare_params(params, batch, input_hw):
    h1, w1sz = input_hw
    l1p, l2p = params["backbone"]
    hp = params["head"]

    wc1 = np.asarray(l1p["w"], np.float32); sc1 = np.asarray(l1p["scale"], np.float32)
    bc1 = np.asarray(l1p["b"], np.float32); sf1 = np.asarray(l1p["shift"], np.float32)
    wc2 = np.asarray(l2p["w"], np.float32); sc2 = np.asarray(l2p["scale"], np.float32)
    bc2 = np.asarray(l2p["b"], np.float32); sf2 = np.asarray(l2p["shift"], np.float32)
    w1h = np.asarray(hp["w1"], np.float32)
    w2h = np.asarray(hp["w2"], np.float32)

    cout1, cin = wc1.shape[0], wc1.shape[1]
    cout2 = wc2.shape[0]
    h2, w2sp = h1 // 2, w1sz // 2
    h3, w3 = h2 // 2, w2sp // 2
    lane1 = w1sz * cout1
    lane2 = w2sp * cout2
    hidden, n_out = w1h.shape[0], w2h.shape[0]
    pad_out = ((n_out + 127) // 128) * 128

    # shape constraints this kernel relies on
    assert (h1 & (h1 - 1)) == 0 and h1 % 4 == 0 and w1sz % 4 == 0
    assert lane1 % 128 == 0 and lane2 % 128 == 0 and hidden % 128 == 0
    assert (batch * cin * h1) % 8 == 0
    assert w1h.shape[1] == cout2 * h3 * w3

    # conv1: one (W, cin*lane1) block per kernel row; BN scale folded in.
    w1op = np.zeros((3 * w1sz, cin * lane1), np.float32)
    for ki in range(3):
        for c in range(cin):
            for j_out in range(w1sz):
                for kj in range(3):
                    j_in = j_out + kj - 1
                    if 0 <= j_in < w1sz:
                        col = c * lane1 + j_out * cout1
                        w1op[ki * w1sz + j_in, col:col + cout1] = wc1[:, c, ki, kj] * sc1

    # conv2: one (lane1, lane2) block per kernel row; reads only the even-j
    # (pooled) lanes of layer-1 output -> pool column selection folded in.
    w2op = np.zeros((3 * lane1, lane2), np.float32)
    for ki in range(3):
        for ci in range(cout1):
            for j_out in range(w2sp):
                for kj in range(3):
                    j_in = j_out + kj - 1
                    if 0 <= j_in < w2sp:
                        w2op[ki * lane1 + (2 * j_in) * cout1 + ci,
                             j_out * cout2:(j_out + 1) * cout2] = wc2[:, ci, ki, kj] * sc2

    # head Linear1: NCHW flatten + pool-2 column selection folded in; block i3
    # of the columns holds the weights for spatial row i3.
    vh = np.zeros((lane2, h3 * hidden), np.float32)
    for i3 in range(h3):
        for j3 in range(w3):
            for co in range(cout2):
                vh[(2 * j3) * cout2 + co, i3 * hidden:(i3 + 1) * hidden] = \
                    w1h[:, co * h3 * w3 + i3 * w3 + j3]

    # head Linear2, lane-padded
    wo = np.zeros((hidden, pad_out), np.float32)
    wo[:, :n_out] = w2h.T

    # packed per-lane constants
    sh1 = np.tile(bc1 * sc1 + sf1, w1sz)
    sh2 = np.tile(bc2 * sc2 + sf2, w2sp)
    b2v = np.zeros((pad_out,), np.float32)
    b2v[:n_out] = np.asarray(hp["b2"], np.float32)
    consts = np.concatenate([sh1, sh2,
                             np.asarray(hp["b1"], np.float32),
                             np.asarray(hp["alpha"], np.float32),
                             b2v])[None, :]

    return {
        "w1": jnp.asarray(w1op, jnp.bfloat16),
        "w2": jnp.asarray(w2op, jnp.bfloat16),
        "vh": jnp.asarray(vh, jnp.bfloat16),
        "wo": jnp.asarray(wo, jnp.bfloat16),
        "consts": jnp.asarray(consts, jnp.float32),
        "meta": dict(n=batch, cin=cin, h=h1, w=w1sz, cout1=cout1, cout2=cout2,
                     hidden=hidden, n_out=n_out,
                     slope1=float(l1p["slope"]), slope2=float(l2p["slope"])),
    }


# ----------------------------------------------------------------------------
# Pure-JAX reference (same math, XLA ops) for validation
# ----------------------------------------------------------------------------
def ref_forward(x_nchw, params):
    x = jnp.transpose(x_nchw, (0, 2, 3, 1))
    for lp in params["backbone"]:
        w_hwio = jnp.transpose(lp["w"], (2, 3, 1, 0))
        y = jax.lax.conv_general_dilated(
            x, w_hwio, window_strides=(1, 1), padding=[(1, 1), (1, 1)],
            dimension_numbers=("NHWC", "HWIO", "NHWC"))
        y = y + lp["b"]
        y = y * lp["scale"] + lp["shift"]
        y = jnp.where(y >= 0, y, lp["slope"] * y)
        y = jax.lax.reduce_window(y, -jnp.inf, jax.lax.max,
                                  (1, 2, 2, 1), (1, 2, 2, 1), "VALID")
        x = y
    n = x.shape[0]
    feat = jnp.transpose(x, (0, 3, 1, 2)).reshape(n, -1)
    hp = params["head"]
    h = feat @ hp["w1"].T + hp["b1"]
    h = jnp.where(h >= 0, h, hp["alpha"] * h)
    return h @ hp["w2"].T + hp["b2"]


# ----------------------------------------------------------------------------
# Deterministic parameter init (synthetic; shapes follow the PyTorch module)
# ----------------------------------------------------------------------------
def _make_conv_layer(keys, cin, cout, k, use_bn, slope):
    eps = 1e-5
    w = 0.1 * jax.random.normal(keys[0], (cout, cin, k, k), jnp.float32)   # OIHW
    b = 0.05 * jax.random.normal(keys[1], (cout,), jnp.float32)
    if use_bn:
        gamma = 1.0 + 0.1 * jax.random.normal(keys[2], (cout,), jnp.float32)
        beta = 0.1 * jax.random.normal(keys[3], (cout,), jnp.float32)
        rmean = 0.1 * jax.random.normal(keys[4], (cout,), jnp.float32)
        rvar = 1.0 + 0.1 * jax.random.uniform(keys[5], (cout,), jnp.float32)
        scale = gamma / jnp.sqrt(rvar + eps)
        shift = beta - rmean * scale
    else:
        scale = jnp.ones((cout,), jnp.float32)
        shift = jnp.zeros((cout,), jnp.float32)
    return {"w": w, "b": b, "scale": scale, "shift": shift, "slope": slope}


def init_params(key):
    ks = jax.random.split(key, 20)
    # backbone_cfg equivalent:
    #   ([8, 3, 1, 1, True,  ('relu', [])],          [2, 2])
    #   ([16, 3, 1, 1, False, ('leakyrelu', [0.1])], [2, 2])
    layer1 = _make_conv_layer(ks[0:6], cin=3, cout=8, k=3, use_bn=True, slope=0.0)
    layer2 = _make_conv_layer(ks[6:12], cin=8, cout=16, k=3, use_bn=False, slope=0.1)

    # head_cfg: in_channels inferred = 16 * 4 * 4 = 256, out_channels = 10
    f_in, hidden, n_out = 16 * 4 * 4, 256, 10
    head = {
        "w1": 0.05 * jax.random.normal(ks[12], (hidden, f_in), jnp.float32),
        "b1": 0.05 * jax.random.normal(ks[13], (hidden,), jnp.float32),
        "alpha": 0.25 * jnp.ones((hidden,), jnp.float32),   # PReLU default init
        "w2": 0.1 * jax.random.normal(ks[14], (n_out, hidden), jnp.float32),
        "b2": 0.05 * jax.random.normal(ks[15], (n_out,), jnp.float32),
    }
    return {"backbone": [layer1, layer2], "head": head}


if __name__ == "__main__":
    key = jax.random.PRNGKey(0)
    pkey, xkey = jax.random.split(key)
    params = init_params(pkey)

    # input: NCHW, batch=2, in_channels=3, input_size=(16, 16)
    batch, in_ch, hh, ww = 2, 3, 16, 16
    x = jax.random.normal(xkey, (batch, in_ch, hh, ww), jnp.float32)

    prepped = prepare_params(params, batch, (hh, ww))

    fwd = jax.jit(lambda xin: ccn_forward(xin, prepped))
    out = jax.block_until_ready(fwd(x))
    assert out.shape == (batch, 10), out.shape

    ref = ref_forward(x, params)
    err = float(jnp.max(jnp.abs(out - ref)))
    assert err < 3e-2, f"mismatch vs reference: max abs err = {err}"

    print("KERNEL_OK")
</pallas_src>

<mosaic_0001>
module attributes {stable_mosaic.version = 11 : i64} {
  func.func @_ccn_fused_kernel(%arg0: memref<6x16x16xf32, #tpu.memory_space<vmem>>, %arg1: memref<48x384xbf16, #tpu.memory_space<vmem>>, %arg2: memref<384x128xbf16, #tpu.memory_space<vmem>>, %arg3: memref<128x1024xbf16, #tpu.memory_space<vmem>>, %arg4: memref<256x128xbf16, #tpu.memory_space<vmem>>, %arg5: memref<1x896xf32, #tpu.memory_space<vmem>>, %arg6: memref<2x10xf32, #tpu.memory_space<vmem>>) attributes {dimension_semantics = [], scalar_prefetch = 0 : i64, scratch_operands = 0 : i64, tpu.core_type = #tpu.core_type<tc>} {
    %c0 = arith.constant 0 : index
    %c0_0 = arith.constant 0 : index
    %0 = vector.load %arg5[%c0, %c0_0] : memref<1x896xf32, #tpu.memory_space<vmem>>, vector<1x128xf32>
    %c0_1 = arith.constant 0 : index
    %c128 = arith.constant 128 : index
    %1 = vector.load %arg5[%c0_1, %c128] : memref<1x896xf32, #tpu.memory_space<vmem>>, vector<1x128xf32>
    %c0_2 = arith.constant 0 : index
    %c256 = arith.constant 256 : index
    %2 = vector.load %arg5[%c0_2, %c256] : memref<1x896xf32, #tpu.memory_space<vmem>>, vector<1x256xf32>
    %c0_3 = arith.constant 0 : index
    %c512 = arith.constant 512 : index
    %3 = vector.load %arg5[%c0_3, %c512] : memref<1x896xf32, #tpu.memory_space<vmem>>, vector<1x256xf32>
    %c0_4 = arith.constant 0 : index
    %c768 = arith.constant 768 : index
    %4 = vector.load %arg5[%c0_4, %c768] : memref<1x896xf32, #tpu.memory_space<vmem>>, vector<1x128xf32>
    %5 = tpu.iota {dimensions = array<i32: 0>} : vector<96x16xi32>
    %c15_i32 = arith.constant 15 : i32
    %6 = vector.broadcast %c15_i32 : i32 to vector<96x16xi32>
    %7 = arith.andi %5, %6 : vector<96x16xi32>
    %c0_i32 = arith.constant 0 : i32
    %8 = vector.broadcast %c0_i32 : i32 to vector<96x16xi32>
    %9 = arith.cmpi ne, %7, %8 : vector<96x16xi32>
    %10 = arith.extui %9 : vector<96x16xi1> to vector<96x16xi32>
    %11 = arith.sitofp %10 : vector<96x16xi32> to vector<96x16xf32>
    %c15_i32_5 = arith.constant 15 : i32
    %12 = vector.broadcast %c15_i32_5 : i32 to vector<96x16xi32>
    %13 = arith.andi %5, %12 : vector<96x16xi32>
    %c15_i32_6 = arith.constant 15 : i32
    %14 = vector.broadcast %c15_i32_6 : i32 to vector<96x16xi32>
    %15 = arith.cmpi ne, %13, %14 : vector<96x16xi32>
    %16 = arith.extui %15 : vector<96x16xi1> to vector<96x16xi32>
    %17 = arith.sitofp %16 : vector<96x16xi32> to vector<96x16xf32>
    %18 = tpu.iota {dimensions = array<i32: 0>} : vector<96x128xi32>
    %c15_i32_7 = arith.constant 15 : i32
    %19 = vector.broadcast %c15_i32_7 : i32 to vector<96x128xi32>
    %20 = arith.andi %18, %19 : vector<96x128xi32>
    %c2_i32 = arith.constant 2 : i32
    %21 = vector.broadcast %c2_i32 : i32 to vector<96x128xi32>
    %22 = arith.cmpi sge, %20, %21 : vector<96x128xi32>
    %23 = arith.extui %22 : vector<96x128xi1> to vector<96x128xi32>
    %24 = arith.sitofp %23 : vector<96x128xi32> to vector<96x128xf32>
    %c15_i32_8 = arith.constant 15 : i32
    %25 = vector.broadcast %c15_i32_8 : i32 to vector<96x128xi32>
    %26 = arith.andi %18, %25 : vector<96x128xi32>
    %c14_i32 = arith.constant 14 : i32
    %27 = vector.broadcast %c14_i32 : i32 to vector<96x128xi32>
    %28 = arith.cmpi slt, %26, %27 : vector<96x128xi32>
    %29 = arith.extui %28 : vector<96x128xi1> to vector<96x128xi32>
    %30 = arith.sitofp %29 : vector<96x128xi32> to vector<96x128xf32>
    %c0_9 = arith.constant 0 : index
    %c0_10 = arith.constant 0 : index
    %c0_11 = arith.constant 0 : index
    %31 = vector.load %arg0[%c0_9, %c0_10, %c0_11] : memref<6x16x16xf32, #tpu.memory_space<vmem>>, vector<1x16x16xf32>
    %32 = vector.shape_cast %31 : vector<1x16x16xf32> to vector<16x16xf32>
    %c1 = arith.constant 1 : index
    %c0_12 = arith.constant 0 : index
    %c0_13 = arith.constant 0 : index
    %33 = vector.load %arg0[%c1, %c0_12, %c0_13] : memref<6x16x16xf32, #tpu.memory_space<vmem>>, vector<1x16x16xf32>
    %34 = vector.shape_cast %33 : vector<1x16x16xf32> to vector<16x16xf32>
    %c2 = arith.constant 2 : index
    %c0_14 = arith.constant 0 : index
    %c0_15 = arith.constant 0 : index
    %35 = vector.load %arg0[%c2, %c0_14, %c0_15] : memref<6x16x16xf32, #tpu.memory_space<vmem>>, vector<1x16x16xf32>
    %36 = vector.shape_cast %35 : vector<1x16x16xf32> to vector<16x16xf32>
    %c3 = arith.constant 3 : index
    %c0_16 = arith.constant 0 : index
    %c0_17 = arith.constant 0 : index
    %37 = vector.load %arg0[%c3, %c0_16, %c0_17] : memref<6x16x16xf32, #tpu.memory_space<vmem>>, vector<1x16x16xf32>
    %38 = vector.shape_cast %37 : vector<1x16x16xf32> to vector<16x16xf32>
    %c4 = arith.constant 4 : index
    %c0_18 = arith.constant 0 : index
    %c0_19 = arith.constant 0 : index
    %39 = vector.load %arg0[%c4, %c0_18, %c0_19] : memref<6x16x16xf32, #tpu.memory_space<vmem>>, vector<1x16x16xf32>
    %40 = vector.shape_cast %39 : vector<1x16x16xf32> to vector<16x16xf32>
    %c5 = arith.constant 5 : index
    %c0_20 = arith.constant 0 : index
    %c0_21 = arith.constant 0 : index
    %41 = vector.load %arg0[%c5, %c0_20, %c0_21] : memref<6x16x16xf32, #tpu.memory_space<vmem>>, vector<1x16x16xf32>
    %42 = vector.shape_cast %41 : vector<1x16x16xf32> to vector<16x16xf32>
    %43 = tpu.concatenate %32, %34, %36, %38, %40, %42 in 0 : vector<16x16xf32>, vector<16x16xf32>, vector<16x16xf32>, vector<16x16xf32>, vector<16x16xf32>, vector<16x16xf32> -> vector<96x16xf32>
    %c1_i32 = arith.constant 1 : i32
    %44 = tpu.dynamic_rotate %43 by %c1_i32 dim 0 : vector<96x16xf32>, i32 -> vector<96x16xf32>
    %45 = arith.mulf %44, %11 : vector<96x16xf32>
    %46 = arith.truncf %45 : vector<96x16xf32> to vector<96x16xbf16>
    %47 = arith.truncf %43 : vector<96x16xf32> to vector<96x16xbf16>
    %c95_i32 = arith.constant 95 : i32
    %48 = tpu.dynamic_rotate %43 by %c95_i32 dim 0 : vector<96x16xf32>, i32 -> vector<96x16xf32>
    %49 = arith.mulf %48, %17 : vector<96x16xf32>
    %50 = arith.truncf %49 : vector<96x16xf32> to vector<96x16xbf16>
    %c0_22 = arith.constant 0 : index
    %c0_23 = arith.constant 0 : index
    %51 = vector.load %arg1[%c0_22, %c0_23] : memref<48x384xbf16, #tpu.memory_space<vmem>>, vector<16x384xbf16>
    %cst = arith.constant dense<0.000000e+00> : vector<96x384xf32>
    %52 = tpu.matmul %46, %51, %cst {dimension_numbers = #tpu.dot_dimension_numbers<[1], [0], [0], [1], [0, 0, 1, 1], [], []>} : vector<96x16xbf16>, vector<16x384xbf16>, vector<96x384xf32> -> vector<96x384xf32>
    %c16 = arith.constant 16 : index
    %c0_24 = arith.constant 0 : index
    %53 = vector.load %arg1[%c16, %c0_24] : memref<48x384xbf16, #tpu.memory_space<vmem>>, vector<16x384xbf16>
    %cst_25 = arith.constant dense<0.000000e+00> : vector<96x384xf32>
    %54 = tpu.matmul %47, %53, %cst_25 {dimension_numbers = #tpu.dot_dimension_numbers<[1], [0], [0], [1], [0, 0, 1, 1], [], []>} : vector<96x16xbf16>, vector<16x384xbf16>, vector<96x384xf32> -> vector<96x384xf32>
    %55 = arith.addf %52, %54 : vector<96x384xf32>
    %c32 = arith.constant 32 : index
    %c0_26 = arith.constant 0 : index
    %56 = vector.load %arg1[%c32, %c0_26] : memref<48x384xbf16, #tpu.memory_space<vmem>>, vector<16x384xbf16>
    %cst_27 = arith.constant dense<0.000000e+00> : vector<96x384xf32>
    %57 = tpu.matmul %50, %56, %cst_27 {dimension_numbers = #tpu.dot_dimension_numbers<[1], [0], [0], [1], [0, 0, 1, 1], [], []>} : vector<96x16xbf16>, vector<16x384xbf16>, vector<96x384xf32> -> vector<96x384xf32>
    %58 = arith.addf %55, %57 : vector<96x384xf32>
    %59 = vector.extract_strided_slice %58 {offsets = [0, 0], sizes = [96, 128], strides = [1, 1]} : vector<96x384xf32> to vector<96x128xf32>
    %60 = vector.extract_strided_slice %58 {offsets = [0, 128], sizes = [96, 128], strides = [1, 1]} : vector<96x384xf32> to vector<96x128xf32>
    %c80_i32 = arith.constant 80 : i32
    %61 = tpu.dynamic_rotate %60 by %c80_i32 dim 0 : vector<96x128xf32>, i32 -> vector<96x128xf32>
    %62 = arith.addf %59, %61 : vector<96x128xf32>
    %63 = vector.extract_strided_slice %58 {offsets = [0, 256], sizes = [96, 128], strides = [1, 1]} : vector<96x384xf32> to vector<96x128xf32>
    %c64_i32 = arith.constant 64 : i32
    %64 = tpu.dynamic_rotate %63 by %c64_i32 dim 0 : vector<96x128xf32>, i32 -> vector<96x128xf32>
    %65 = arith.addf %62, %64 : vector<96x128xf32>
    %66 = vector.broadcast %0 : vector<1x128xf32> to vector<96x128xf32>
    %67 = arith.addf %65, %66 : vector<96x128xf32>
    %cst_28 = arith.constant 0.000000e+00 : f32
    %68 = vector.broadcast %cst_28 : f32 to vector<96x128xf32>
    %69 = arith.maximumf %67, %68 : vector<96x128xf32>
    %c95_i32_29 = arith.constant 95 : i32
    %70 = tpu.dynamic_rotate %69 by %c95_i32_29 dim 0 : vector<96x128xf32>, i32 -> vector<96x128xf32>
    %71 = arith.maximumf %69, %70 : vector<96x128xf32>
    %c120_i32 = arith.constant 120 : i32
    %72 = tpu.dynamic_rotate %71 by %c120_i32 dim 1 : vector<96x128xf32>, i32 -> vector<96x128xf32>
    %73 = arith.maximumf %71, %72 : vector<96x128xf32>
    %c2_i32_30 = arith.constant 2 : i32
    %74 = tpu.dynamic_rotate %73 by %c2_i32_30 dim 0 : vector<96x128xf32>, i32 -> vector<96x128xf32>
    %75 = arith.mulf %74, %24 : vector<96x128xf32>
    %76 = arith.truncf %75 : vector<96x128xf32> to vector<96x128xbf16>
    %77 = arith.truncf %73 : vector<96x128xf32> to vector<96x128xbf16>
    %c94_i32 = arith.constant 94 : i32
    %78 = tpu.dynamic_rotate %73 by %c94_i32 dim 0 : vector<96x128xf32>, i32 -> vector<96x128xf32>
    %79 = arith.mulf %78, %30 : vector<96x128xf32>
    %80 = arith.truncf %79 : vector<96x128xf32> to vector<96x128xbf16>
    %c0_31 = arith.constant 0 : index
    %c0_32 = arith.constant 0 : index
    %81 = vector.load %arg2[%c0_31, %c0_32] : memref<384x128xbf16, #tpu.memory_space<vmem>>, vector<128x128xbf16>
    %cst_33 = arith.constant dense<0.000000e+00> : vector<96x128xf32>
    %82 = tpu.matmul %76, %81, %cst_33 {dimension_numbers = #tpu.dot_dimension_numbers<[1], [0], [0], [1], [0, 0, 1, 1], [], []>} : vector<96x128xbf16>, vector<128x128xbf16>, vector<96x128xf32> -> vector<96x128xf32>
    %c128_34 = arith.constant 128 : index
    %c0_35 = arith.constant 0 : index
    %83 = vector.load %arg2[%c128_34, %c0_35] : memref<384x128xbf16, #tpu.memory_space<vmem>>, vector<128x128xbf16>
    %cst_36 = arith.constant dense<0.000000e+00> : vector<96x128xf32>
    %84 = tpu.matmul %77, %83, %cst_36 {dimension_numbers = #tpu.dot_dimension_numbers<[1], [0], [0], [1], [0, 0, 1, 1], [], []>} : vector<96x128xbf16>, vector<128x128xbf16>, vector<96x128xf32> -> vector<96x128xf32>
    %85 = arith.addf %82, %84 : vector<96x128xf32>
    %c256_37 = arith.constant 256 : index
    %c0_38 = arith.constant 0 : index
    %86 = vector.load %arg2[%c256_37, %c0_38] : memref<384x128xbf16, #tpu.memory_space<vmem>>, vector<128x128xbf16>
    %cst_39 = arith.constant dense<0.000000e+00> : vector<96x128xf32>
    %87 = tpu.matmul %80, %86, %cst_39 {dimension_numbers = #tpu.dot_dimension_numbers<[1], [0], [0], [1], [0, 0, 1, 1], [], []>} : vector<96x128xbf16>, vector<128x128xbf16>, vector<96x128xf32> -> vector<96x128xf32>
    %88 = arith.addf %85, %87 : vector<96x128xf32>
    %89 = vector.broadcast %1 : vector<1x128xf32> to vector<96x128xf32>
    %90 = arith.addf %88, %89 : vector<96x128xf32>
    %cst_40 = arith.constant 0.000000e+00 : f32
    %91 = vector.broadcast %cst_40 : f32 to vector<96x128xf32>
    %92 = arith.cmpf oge, %90, %91 : vector<96x128xf32>
    %cst_41 = arith.constant 1.000000e-01 : f32
    %93 = vector.broadcast %cst_41 : f32 to vector<96x128xf32>
    %94 = arith.mulf %93, %90 : vector<96x128xf32>
    %95 = arith.select %92, %90, %94 : vector<96x128xi1>, vector<96x128xf32>
    %c94_i32_42 = arith.constant 94 : i32
    %96 = tpu.dynamic_rotate %95 by %c94_i32_42 dim 0 : vector<96x128xf32>, i32 -> vector<96x128xf32>
    %97 = arith.maximumf %95, %96 : vector<96x128xf32>
    %c112_i32 = arith.constant 112 : i32
    %98 = tpu.dynamic_rotate %97 by %c112_i32 dim 1 : vector<96x128xf32>, i32 -> vector<96x128xf32>
    %99 = arith.maximumf %97, %98 : vector<96x128xf32>
    %100 = arith.truncf %99 : vector<96x128xf32> to vector<96x128xbf16>
    %c0_43 = arith.constant 0 : index
    %c0_44 = arith.constant 0 : index
    %101 = vector.load %arg3[%c0_43, %c0_44] : memref<128x1024xbf16, #tpu.memory_space<vmem>>, vector<128x1024xbf16>
    %cst_45 = arith.constant dense<0.000000e+00> : vector<96x1024xf32>
    %102 = tpu.matmul %100, %101, %cst_45 {dimension_numbers = #tpu.dot_dimension_numbers<[1], [0], [0], [1], [0, 0, 1, 1], [], []>} : vector<96x128xbf16>, vector<128x1024xbf16>, vector<96x1024xf32> -> vector<96x1024xf32>
    %103 = vector.extract_strided_slice %102 {offsets = [0, 0], sizes = [96, 256], strides = [1, 1]} : vector<96x1024xf32> to vector<96x256xf32>
    %104 = vector.extract_strided_slice %102 {offsets = [0, 256], sizes = [96, 256], strides = [1, 1]} : vector<96x1024xf32> to vector<96x256xf32>
    %c92_i32 = arith.constant 92 : i32
    %105 = tpu.dynamic_rotate %104 by %c92_i32 dim 0 : vector<96x256xf32>, i32 -> vector<96x256xf32>
    %106 = arith.addf %103, %105 : vector<96x256xf32>
    %107 = vector.extract_strided_slice %102 {offsets = [0, 512], sizes = [96, 256], strides = [1, 1]} : vector<96x1024xf32> to vector<96x256xf32>
    %c88_i32 = arith.constant 88 : i32
    %108 = tpu.dynamic_rotate %107 by %c88_i32 dim 0 : vector<96x256xf32>, i32 -> vector<96x256xf32>
    %109 = arith.addf %106, %108 : vector<96x256xf32>
    %110 = vector.extract_strided_slice %102 {offsets = [0, 768], sizes = [96, 256], strides = [1, 1]} : vector<96x1024xf32> to vector<96x256xf32>
    %c84_i32 = arith.constant 84 : i32
    %111 = tpu.dynamic_rotate %110 by %c84_i32 dim 0 : vector<96x256xf32>, i32 -> vector<96x256xf32>
    %112 = arith.addf %109, %111 : vector<96x256xf32>
    %113 = vector.broadcast %2 : vector<1x256xf32> to vector<96x256xf32>
    %114 = arith.addf %112, %113 : vector<96x256xf32>
    %cst_46 = arith.constant 0.000000e+00 : f32
    %115 = vector.broadcast %cst_46 : f32 to vector<96x256xf32>
    %116 = arith.cmpf oge, %114, %115 : vector<96x256xf32>
    %117 = vector.broadcast %3 : vector<1x256xf32> to vector<96x256xf32>
    %118 = arith.mulf %117, %114 : vector<96x256xf32>
    %119 = arith.select %116, %114, %118 : vector<96x256xi1>, vector<96x256xf32>
    %120 = arith.truncf %119 : vector<96x256xf32> to vector<96x256xbf16>
    %c0_47 = arith.constant 0 : index
    %c0_48 = arith.constant 0 : index
    %121 = vector.load %arg4[%c0_47, %c0_48] : memref<256x128xbf16, #tpu.memory_space<vmem>>, vector<256x128xbf16>
    %cst_49 = arith.constant dense<0.000000e+00> : vector<96x128xf32>
    %122 = tpu.matmul %120, %121, %cst_49 {dimension_numbers = #tpu.dot_dimension_numbers<[1], [0], [0], [1], [0, 0, 1, 1], [], []>} : vector<96x256xbf16>, vector<256x128xbf16>, vector<96x128xf32> -> vector<96x128xf32>
    %123 = vector.broadcast %4 : vector<1x128xf32> to vector<96x128xf32>
    %124 = arith.addf %122, %123 : vector<96x128xf32>
    %125 = vector.extract_strided_slice %124 {offsets = [0, 0], sizes = [1, 10], strides = [1, 1]} : vector<96x128xf32> to vector<1x10xf32>
    %c0_50 = arith.constant 0 : index
    %c0_51 = arith.constant 0 : index
    %126 = vector.load %arg6[%c0_50, %c0_51] : memref<2x10xf32, #tpu.memory_space<vmem>>, vector<1x10xf32>
    tpu.vector_store %arg6[%c0_50, %c0_51], %125 {strides = array<i32>} : memref<2x10xf32, #tpu.memory_space<vmem>>, vector<1x10xf32>,
    %127 = vector.extract_strided_slice %124 {offsets = [48, 0], sizes = [1, 10], strides = [1, 1]} : vector<96x128xf32> to vector<1x10xf32>
    %c1_52 = arith.constant 1 : index
    %c0_53 = arith.constant 0 : index
    %128 = vector.load %arg6[%c1_52, %c0_53] : memref<2x10xf32, #tpu.memory_space<vmem>>, vector<1x10xf32>
    tpu.vector_store %arg6[%c1_52, %c0_53], %127 {strides = array<i32>} : memref<2x10xf32, #tpu.memory_space<vmem>>, vector<1x10xf32>,
    return
  }
}

</mosaic_0001>

<bundles_post_ra>
// kernel: _lambda_.1
= control target key start
LH: loop header
LB: loop body
LE: loop exit
PB: predicated region body
PF: predicated region fallthrough
CT: control target
= control target key end

     0   :  { %v5178_v2 = vmov 0   ;;  %vm332_vm0 = vcmask 130048   ;;  %v30_v11 = vlaneseq  ;;  %v3692_v46 = vmov 0.0   ;;  %s5171_s0 = inlined_call_operand.vmem [shape: f32[6,16,16], index: 0, kind: input, shape index: {}]   ;;  %s5172_s1 = inlined_call_operand.vmem [shape: bf16[48,384], index: 1, kind: input, shape index: {}]   ;;  %s5173_s2 = inlined_call_operand.vmem [shape: bf16[384,128], index: 2, kind: input, shape index: {}]   ;;  %s5174_s3 = inlined_call_operand.vmem [shape: bf16[128,1024], index: 3, kind: input, shape index: {}]   ;;  %s5175_s4 = inlined_call_operand.vmem [shape: bf16[256,128], index: 4, kind: input, shape index: {}]   ;;  %s5176_s5 = inlined_call_operand.vmem [shape: f32[1,896], index: 5, kind: input, shape index: {}]   ;;  %s5177_s6 = inlined_call_operand.hbm [shape: f32[2,10], index: 6, kind: output, shape index: {}]  }
   0x1   :  { %v3615_v0 = vld [vmem:[%s5172_s1 + $0x1c] ss:$12 sps:$4 sm:$0xff]   ;;  %v3617_v1 = vld [vmem:[%s5172_s1 + $0x18] ss:$12 sps:$4 sm:$0xff]   ;;  %383 = vmatprep.mubr.bf16.mxu0 %v5178_v2  ;;  %433 = vmatprep.mubr.bf16.mxu1 %v5178_v2  ;;  %v3754_v6 = vld [vmem:[%s5171_s0 + $0x50] sm:$0xff] }
   0x2   :  { %v3742_v3 = vld [vmem:[%s5171_s0] sm:$0xff]  ;;  %v3747_v4 = vld [vmem:[%s5171_s0 + $0x8] sm:$0xff]  ;;  %351 = vmatprep.subr.bf16.mxu0 %v3615_v0  ;;  %3482 = vmatprep.subr.bf16.mxu1 %v3615_v0  ;;  %v3759_v7 = vld [vmem:[%s5171_s0 + $0x58] sm:$0xff]  ;;  %v3787_v15 = vshrl.u32 %v30_v11, 7  ;;  %v226_v27 = vrot.slane %v3754_v6, 7 }
   0x3   :  { %v259_v5 = vpack.c.bf16 %v3747_v4, %v3742_v3  ;;  %352 = vmatpush1.bf16.msra.mxu0 %v3617_v1  ;;  %3483 = vmatpush1.bf16.msra.mxu1 %v3617_v1  ;;  %v3763_v8 = vpack.c.bf16 %v3759_v7, %v3754_v6  ;;  %v3618_v9 = vld [vmem:[%s5172_s1] ss:$12 sps:$4 sm:$0xff]   ;;  %v3620_v10 = vld [vmem:[%s5172_s1 + $0x4] ss:$12 sps:$4 sm:$0xff]   ;;  %v3785_v14 = vld [vmem:[%s5171_s0 + $0x18] sm:$0xff]  ;;  %v216_v21 = vrot.slane %v3742_v3, 7 }
   0x4   :  { %v3621_v12 = vld [vmem:[%s5172_s1 + $0x20] ss:$12 sps:$4 sm:$0xff]   ;;  %559 = vmatprep.subr.bf16.mxu0 %v3620_v10  ;;  %v3780_v13 = vld [vmem:[%s5171_s0 + $0x10] sm:$0xff]  ;;  %v3810_v22 = vadd.s32 16, %v3787_v15  ;;  %v217_v24 = vrot.slane %v3747_v4, 7  ;;  %v265_v25 = vrot.slane %v3742_v3, 1 }
   0x5   :  { %3356 = vmatprep.subr.bf16.mxu1 %v3621_v12  ;;  %v3792_v16 = vld [vmem:[%s5171_s0 + $0x20] sm:$0xff]  ;;  %v3797_v17 = vld [vmem:[%s5171_s0 + $0x28] sm:$0xff]  ;;  %v260_v18 = vpack.c.bf16 %v3785_v14, %v3780_v13  ;;  %v266_v26 = vrot.slane %v3747_v4, 1  ;;  %v227_v28 = vrot.slane %v3759_v7, 7  ;;  %v218_v29 = vrot.slane %v3780_v13, 7  ;;  %v3827_v31 = vld [vmem:[%s5171_s0 + $0x30] sm:$0xff] }
   0x6   :  { %3092 = vmatmul.mubr.msk.bf16.vlgmr.msra.gmra.mrb[0].mxu0 %vm332_vm0, %v259_v5  ;;  %3097 = vmatmul.mubr.msk.bf16.vlgmr.msra.gmra.mrb[0].mxu1 %vm332_vm0, %v3763_v8  ;;  %v3622_v19 = vld [vmem:[%s5172_s1 + $0x8] ss:$12 sps:$4 sm:$0xff]   ;;  %v261_v20 = vpack.c.bf16 %v3797_v17, %v3792_v16  ;;  %v267_v30 = vrot.slane %v3780_v13, 1  ;;  %v3832_v32 = vld [vmem:[%s5172_s1 + $0x38] ss:$12 sps:$4 sm:$0xff]   ;;  %vm228_vm1 = vcmp.lt.s32.totalorder %v3787_v15, 1 }
   0x7   :  { %560 = vmatpush1.bf16.msra.mxu0 %v3618_v9  ;;  %3357 = vmatpush3.bf16.msra.mxu1 %v3621_v12  ;;  %v3625_v23 = vld [vmem:[%s5172_s1 + $0x34] ss:$12 sps:$4 sm:$0xff]   ;;  %v3840_v33 = vld [vmem:[%s5171_s0 + $0x38] sm:$0xff]  ;;  %v43_v35 = vand.u32 15, %v3787_v15  ;;  %v45_v36 = vand.u32 15, %v3810_v22  ;;  %v3852_v37 = vld [vmem:[%s5171_s0 + $0x48] sm:$0xff]  ;;  %v240_v48 = vsel %vm228_vm1, %v227_v28, %v216_v21  ;;  %v239_v60 = vsel %vm228_vm1, %v216_v21, %v217_v24 }
   0x8   :  { %393 = vmatprep.mubr.bf16.mxu0 %v5178_v2  ;;  %3358 = vmatprep.mubr.msk.bf16.mxu1 %vm332_vm0, %v259_v5  ;;  %v3845_v34 = vld [vmem:[%s5171_s0 + $0x40] sm:$0xff]  ;;  %v3857_v38 = vadd.s32 32, %v3787_v15  ;;  %v219_v39 = vrot.slane %v3785_v14, 7  ;;  %v268_v40 = vrot.slane %v3785_v14, 1  ;;  %v262_v41 = vpack.c.bf16 %v3840_v33, %v3827_v31 }
   0x9   :  { %3370 = vmatprep.subr.bf16.mxu1 %v3622_v19  ;;  %771 = vmatprep.subr.bf16.mxu0 %v3625_v23  ;;  %vm55_vm2 = vcmp.ne.s32.totalorder %v43_v35, 0  ;;  %v3865_v42 = vadd.s32 24, %v3787_v15  ;;  %v220_v43 = vrot.slane %v3792_v16, 7  ;;  %v263_v44 = vpack.c.bf16 %v3852_v37, %v3845_v34 }
   0xa   :  { %v221_v45 = vrot.slane %v3797_v17, 7  ;;  %v3055_v47 = vsel %vm55_vm2, 1.0, %v3692_v46  ;;  %vm3878_vm3 = vcmp.ne.s32.totalorder %v45_v36, 0  ;;  %v269_v50 = vrot.slane %v3792_v16, 1 }
   0xb   :  { %v47_v51 = vand.u32 15, %v3857_v38  ;;  %v3885_v52 = vadd.s32 48, %v3787_v15  ;;  %v3890_v53 = vadd.s32 64, %v3787_v15  ;;  %v3893_v54 = vadd.s32 80, %v3787_v15 }
   0xc   :  { %v46_v55 = vand.u32 15, %v3865_v42  ;;  %v241_v56 = vmul.f32 %v3055_v47, %v240_v48  ;;  %v3899_v57 = vadd.s32 8, %v3787_v15  ;;  %v270_v58 = vrot.slane %v3797_v17, 1 }
   0xd   :  { %v222_v59 = vrot.slane %v3827_v31, 7  ;;  %vm59_vm4 = vcmp.ne.s32.totalorder %v47_v51, 0  ;;  %v49_v61 = vand.u32 15, %v3885_v52  ;;  %v51_v62 = vand.u32 15, %v3890_v53 }
   0xe   :  { %3093 = vmatmul.mubr.msk.bf16.gmra.mrb[4].mxu0 %vm332_vm0, %v260_v18  ;;  %3359 = vmatmul.mubr.msk.bf16.vlgmr.msra.gmra.mrb[4].mxu1 %vm332_vm0, %v260_v18  ;;  %v53_v63 = vand.u32 15, %v3893_v54  ;;  %v3056_v0 = vsel %vm3878_vm3, 1.0, %v3692_v46  ;;  %v238_v1 = vsel %vm228_vm1, %v217_v24, %v218_v29  ;;  %v253_v5 = vpack.c.bf16 %v239_v60, %v241_v56 }
   0xf   :  { %403 = vmatprep.mubr.bf16.mxu0 %v5178_v2  ;;  %3362 = vmatprep.mubr.msk.bf16.mxu1 %vm332_vm0, %v261_v20  ;;  %v44_v9 = vand.u32 15, %v3899_v57  ;;  %v223_v10 = vrot.slane %v3840_v33, 7  ;;  %v3057_v11 = vsel %vm59_vm4, 1.0, %v3692_v46  ;;  %v236_v12 = vsel %vm228_vm1, %v219_v39, %v220_v43 }
  0x10   :  { %3371 = vmatpush3.bf16.msra.mxu1 %v3622_v19  ;;  %v271_v18 = vrot.slane %v3827_v31, 1  ;;  %vm61_vm5 = vcmp.ne.s32.totalorder %v49_v61, 0  ;;  %v237_v19 = vsel %vm228_vm1, %v218_v29, %v219_v39  ;;  %vm63_vm6 = vcmp.ne.s32.totalorder %v51_v62, 0 }
  0x11   :  { %3384 = vmatprep.subr.bf16.mxu1 %v3832_v32  ;;  %vm65_vm7 = vcmp.ne.s32.totalorder %v53_v63, 0  ;;  %v224_v21 = vrot.slane %v3845_v34, 7  ;;  %v245_v23 = vmul.f32 %v3057_v11, %v236_v12  ;;  %vm92_vm8 = vcmp.ne.s32.totalorder %v44_v9, 15 }
  0x12   :  { %v3938_v24 = vadd.s32 40, %v3787_v15  ;;  %v235_v29 = vsel %vm228_vm1, %v220_v43, %v221_v45  ;;  %v3058_v39 = vsel %vm61_vm5, 1.0, %v3692_v46  ;;  %vm277_vm9 = vcmp.lt.s32.totalorder %v3787_v15, 7 }
  0x13   :  { %v3060_v47 = vsel %vm65_vm7, 1.0, %v3692_v46  ;;  %v3061_v49 = vsel %vm92_vm8, 1.0, %v3692_v46  ;;  %v3949_v56 = vadd.s32 56, %v3787_v15  ;;  %v255_v60 = vpack.c.bf16 %v235_v29, %v245_v23 }
  0x14   :  { %v48_v43 = vand.u32 15, %v3938_v24  ;;  %v232_v11 = vsel %vm228_vm1, %v223_v10, %v224_v21  ;;  %vm3967_vm10 = vcmp.ne.s32.totalorder %v46_v55, 15 }
  0x16   :  { %3094 = vmatmul.mubr.msk.bf16.gmra.mrb[8].mxu0 %vm332_vm0, %v261_v20  ;;  %3363 = vmatmul.mubr.msk.bf16.gmra.mrb[8].mxu1 %vm332_vm0, %v262_v41  ;;  %v243_v20 = vmul.f32 %v3056_v0, %v238_v1  ;;  %v234_v0 = vsel %vm228_vm1, %v221_v45, %v222_v59  ;;  %v3955_v1 = vadd.s32 72, %v3787_v15  ;;  %v233_v45 = vsel %vm228_vm1, %v222_v59, %v223_v10 }
  0x17   :  { %413 = vmatprep.mubr.bf16.mxu0 %v5178_v2  ;;  %3366 = vmatprep.mubr.msk.bf16.mxu1 %vm332_vm0, %v263_v44  ;;  %v247_v12 = vmul.f32 %v3058_v39, %v234_v0  ;;  %vm3979_vm11 = vcmp.ne.s32.totalorder %v48_v43, 15 }
  0x18   :  { %v254_v48 = vpack.c.bf16 %v237_v19, %v243_v20 }
  0x19   :  { %v256_v10 = vpack.c.bf16 %v233_v45, %v247_v12 }
  0x1e   :  { %3095 = vmatmul.mubr.msk.bf16.gmra.mrb[12].mxu0 %vm332_vm0, %v262_v41  ;;  %3367 = vmatmul.mubr.msk.bf16.gmra.mrb[12].mxu1 %vm332_vm0, %v3763_v8  ;;  %v225_v8 = vrot.slane %v3852_v37, 7  ;;  %v3059_v41 = vsel %vm63_vm6, 1.0, %v3692_v46 }
  0x1f   :  { %423 = vmatprep.mubr.bf16.mxu0 %v5178_v2  ;;  %3372 = vmatprep.mubr.msk.bf16.mxu1 %vm332_vm0, %v253_v5  ;;  %v249_v20 = vmul.f32 %v3059_v41, %v232_v11 }
  0x20   :  { %v231_v23 = vsel %vm228_vm1, %v224_v21, %v225_v8  ;;  %v230_v29 = vsel %vm228_vm1, %v225_v8, %v226_v27  ;;  %v287_v21 = vsel %vm277_vm9, %v266_v26, %v267_v30  ;;  %v229_v8 = vsel %vm228_vm1, %v226_v27, %v227_v28 }
  0x21   :  { %v251_v39 = vmul.f32 %v3060_v47, %v230_v29  ;;  %v291_v41 = vmul.f32 %v3061_v49, %v287_v21 }
  0x26   :  { %3096 = vmatmul.mubr.msk.bf16.gmra.mrb[16].mxu0 %vm332_vm0, %v263_v44  ;;  %3373 = vmatmul.mubr.msk.bf16.vlgmr.msra.gmra.mrb[4].mxu1 %vm332_vm0, %v254_v48  ;;  %v3623_v44 = vld [vmem:[%s5172_s1 + $0x30] ss:$12 sps:$4 sm:$0xff]  }
  0x27   :  { %591 = vmatprep.mubr.bf16.mxu0 %v5178_v2  ;;  %3376 = vmatprep.mubr.msk.bf16.mxu1 %vm332_vm0, %v255_v60 }
  0x28   :  { %3385 = vmatpush3.bf16.msra.mxu1 %v3832_v32  ;;  %v3987_v32 = vpack.c.bf16 %v231_v23, %v249_v20 }
  0x2e   :  { %3107 = vmatmul.mubr.msk.bf16.vlgmr.msra.gmra.mrb[0].mxu0 %vm332_vm0, %v253_v5  ;;  %3377 = vmatmul.mubr.msk.bf16.gmra.mrb[8].mxu1 %vm332_vm0, %v256_v10  ;;  %v288_v5 = vsel %vm277_vm9, %v265_v25, %v266_v26 }
  0x2f   :  { %772 = vmatpush1.bf16.msra.mxu0 %v3623_v44  ;;  %601 = vmatprep.mubr.bf16.mxu0 %v5178_v2 }
  0x30   :  { %3380 = vmatprep.mubr.msk.bf16.mxu1 %vm332_vm0, %v3987_v32 }
  0x31   :  { %11 = vsyncpa [#allocation3], 0  ;;  %v258_v47 = vpack.c.bf16 %v229_v8, %v251_v39  ;;  %v3062_v0 = vsel %vm3967_vm10, 1.0, %v3692_v46  ;;  %v285_v27 = vsel %vm277_vm9, %v268_v40, %v269_v50  ;;  %v302_v28 = vpack.c.bf16 %v291_v41, %v288_v5  ;;  %v3627_v41 = vld [vmem:[%s5173_s2 + $0x40] sm:$0xff]   ;;  %v3628_v5 = vld [vmem:[%s5173_s2 + $0x48] sm:$0xff]   ;;  %s3693_s7 = smov 120  }
  0x32   :  { %v3063_v4 = vsel %vm3979_vm11, 1.0, %v3692_v46  ;;  %v283_v26 = vsel %vm277_vm9, %v270_v58, %v271_v18  ;;  %v50_v49 = vand.u32 15, %v3949_v56  ;;  %v52_v11 = vand.u32 15, %v3955_v1  ;;  %3398 = vmatprep.subr.bf16.mxu1 %v3627_v41  ;;  %v3645_v52 = vld [vmem:[%s5173_s2 + $0x90] sm:$0xff]   ;;  %s3694_s27 = smov 112   ;;  %s3695_s15 = smov [#allocation2]  }
  0x33   :  { %v275_v12 = vrot.slane %v3754_v6, 1  ;;  %v293_v45 = vmul.f32 %v3062_v0, %v285_v27  ;;  %v286_v19 = vsel %vm277_vm9, %v267_v30, %v268_v40  ;;  %v272_v20 = vrot.slane %v3840_v33, 1  ;;  %v3630_v0 = vld [vmem:[%s5173_s2 + $0x58] sm:$0xff]  }
  0x34   :  { %v273_v44 = vrot.slane %v3845_v34, 1  ;;  %v295_v6 = vmul.f32 %v3063_v4, %v283_v26  ;;  %v284_v13 = vsel %vm277_vm9, %v269_v50, %v270_v58  ;;  %vm98_vm12 = vcmp.ne.s32.totalorder %v50_v49, 15 }
  0x35   :  { %v4055_v14 = vadd.s32 88, %v3787_v15  ;;  %vm100_vm13 = vcmp.ne.s32.totalorder %v52_v11, 15  ;;  %v303_v30 = vpack.c.bf16 %v293_v45, %v286_v19  ;;  %v3064_v34 = vsel %vm98_vm12, 1.0, %v3692_v46 }
  0x36   :  { %3108 = vmatmul.mubr.msk.bf16.gmra.mrb[4].mxu0 %vm332_vm0, %v254_v48  ;;  %3381 = vmatmul.mubr.msk.bf16.gmra.mrb[12].mxu1 %vm332_vm0, %v258_v47  ;;  %v274_v48 = vrot.slane %v3852_v37, 1  ;;  %v304_v33 = vpack.c.bf16 %v295_v6, %v284_v13  ;;  %v281_v17 = vsel %vm277_vm9, %v272_v20, %v273_v44  ;;  %v3065_v16 = vsel %vm100_vm13, 1.0, %v3692_v46 }
  0x37   :  { %611 = vmatprep.mubr.bf16.mxu0 %v5178_v2  ;;  %3386 = vmatprep.mubr.msk.bf16.mxu1 %vm332_vm0, %v302_v28  ;;  %v54_v40 = vand.u32 15, %v4055_v14  ;;  %v297_v50 = vmul.f32 %v3064_v34, %v281_v17  ;;  %v276_v58 = vrot.slane %v3759_v7, 1  ;;  %v282_v23 = vsel %vm277_vm9, %v271_v18, %v272_v20 }
  0x38   :  { %v279_v37 = vsel %vm277_vm9, %v274_v48, %v275_v12  ;;  %v280_v29 = vsel %vm277_vm9, %v273_v44, %v274_v48  ;;  %vm127_vm15 = vcmp.ge.s32.totalorder %v43_v35, 2  ;;  %vm1119_vm1 = vcmp.lt.s32.totalorder %v3787_v15, 2 }
  0x39   :  { %v299_v59 = vmul.f32 %v3065_v16, %v279_v37  ;;  %vm102_vm14 = vcmp.ne.s32.totalorder %v54_v40, 15  ;;  %v289_v39 = vsel %vm277_vm9, %v276_v58, %v265_v25  ;;  %v278_v18 = vsel %vm277_vm9, %v275_v12, %v276_v58 }
  0x3a   :  { %v3066_v7 = vsel %vm102_vm14, 1.0, %v3692_v46  ;;  %vm131_vm2 = vcmp.ge.s32.totalorder %v47_v51, 2  ;;  %vm135_vm3 = vcmp.ge.s32.totalorder %v51_v62, 2  ;;  %vm133_vm4 = vcmp.ge.s32.totalorder %v49_v61, 2 }
  0x3b   :  { %v306_v21 = vpack.c.bf16 %v299_v59, %v280_v29  ;;  %v301_v31 = vmul.f32 %v3066_v7, %v289_v39  ;;  %v3070_v62 = vsel %vm133_vm4, 1.0, %v3692_v46  ;;  %vm137_vm5 = vcmp.ge.s32.totalorder %v53_v63, 2 }
  0x3c   :  { %vm164_vm6 = vcmp.lt.s32.totalorder %v44_v9, 14  ;;  %vm1168_vm7 = vcmp.lt.s32.totalorder %v3787_v15, 6  ;;  %v3647_v9 = vld [vmem:[%s5173_s2 + $0xa0] sm:$0xff]   ;;  %vm166_vm8 = vcmp.lt.s32.totalorder %v46_v55, 14  ;;  %vm170_vm10 = vcmp.lt.s32.totalorder %v50_v49, 14 }
  0x3d   :  { %v307_v8 = vpack.c.bf16 %v301_v31, %v278_v18  ;;  %v3073_v57 = vsel %vm164_vm6, 1.0, %v3692_v46  ;;  %vm172_vm11 = vcmp.lt.s32.totalorder %v52_v11, 14  ;;  %vm174_vm12 = vcmp.lt.s32.totalorder %v54_v40, 14 }
  0x3e   :  { %3109 = vmatmul.mubr.msk.bf16.gmra.mrb[8].mxu0 %vm332_vm0, %v255_v60  ;;  %3387 = vmatmul.mubr.msk.bf16.vlgmr.msra.gmra.mrb[4].mxu1 %vm332_vm0, %v303_v30  ;;  %v305_v60 = vpack.c.bf16 %v297_v50, %v282_v23  ;;  %v4147_v23 = vld [vmem:[%s5176_s5] ss:$0 sm:$0xff]  ;;  %v3077_v49 = vsel %vm172_vm11, 1.0, %v3692_v46 }
  0x3f   :  { %621 = vmatprep.mubr.bf16.mxu0 %v5178_v2  ;;  %3390 = vmatprep.mubr.msk.bf16.mxu1 %vm332_vm0, %v304_v33 }
  0x40   :  { %3399 = vmatpush3.bf16.msra.mxu1 %v3627_v41  ;;  %v3632_v41 = vld [vmem:[%s5173_s2 + $0x68] sm:$0xff]  }
  0x41   :  { %3400 = vmatprep.subr.bf16.mxu1 %v3628_v5 }
  0x44   :  { %3401 = vmatpush3.bf16.msra.mxu1 %v3628_v5 }
  0x46   :  { %3110 = vmatmul.mubr.msk.bf16.gmra.mrb[12].mxu0 %vm332_vm0, %v256_v10  ;;  %3391 = vmatmul.mubr.msk.bf16.gmra.mrb[8].mxu1 %vm332_vm0, %v305_v60 }
  0x47   :  { %631 = vmatprep.mubr.bf16.mxu0 %v5178_v2  ;;  %3394 = vmatprep.mubr.msk.bf16.mxu1 %vm332_vm0, %v306_v21 }
  0x4e   :  { %3111 = vmatmul.mubr.msk.bf16.gmra.mrb[16].mxu0 %vm332_vm0, %v3987_v32  ;;  %3395 = vmatmul.mubr.msk.bf16.gmra.mrb[12].mxu1 %vm332_vm0, %v307_v8 }
  0x4f   :  { %641 = vmatprep.mubr.bf16.mxu0 %v5178_v2 }
  0x56   :  { %3112 = vmatmul.mubr.msk.bf16.gmra.mrb[20].mxu0 %vm332_vm0, %v258_v47  ;;  %v3629_v47 = vld [vmem:[%s5173_s2 + $0x50] sm:$0xff]  }
  0x57   :  { %803 = vmatprep.mubr.bf16.mxu0 %v5178_v2  ;;  %3402 = vmatprep.subr.bf16.mxu1 %v3629_v47 }
  0x58   :  { %3403 = vmatpush3.bf16.msra.mxu1 %v3629_v47 }
  0x59   :  { %3404 = vmatprep.subr.bf16.mxu1 %v3630_v0 }
  0x5c   :  { %3405 = vmatpush3.bf16.msra.mxu1 %v3630_v0 }
  0x5e   :  { %3122 = vmatmul.mubr.msk.bf16.vlgmr.msra.gmra.mrb[0].mxu0 %vm332_vm0, %v302_v28 }
  0x5f   :  { %813 = vmatprep.mubr.bf16.mxu0 %v5178_v2 }
  0x66   :  { %3123 = vmatmul.mubr.msk.bf16.gmra.mrb[4].mxu0 %vm332_vm0, %v303_v30 }
  0x67   :  { %823 = vmatprep.mubr.bf16.mxu0 %v5178_v2 }
  0x6e   :  { %3124 = vmatmul.mubr.msk.bf16.gmra.mrb[8].mxu0 %vm332_vm0, %v304_v33 }
  0x6f   :  { %833 = vmatprep.mubr.bf16.mxu0 %v5178_v2 }
  0x76   :  { %3125 = vmatmul.mubr.msk.bf16.gmra.mrb[12].mxu0 %vm332_vm0, %v305_v60 }
  0x77   :  { %843 = vmatprep.mubr.bf16.mxu0 %v5178_v2 }
  0x7e   :  { %3126 = vmatmul.mubr.msk.bf16.gmra.mrb[16].mxu0 %vm332_vm0, %v306_v21  ;;  %v3631_v21 = vld [vmem:[%s5173_s2 + $0x60] sm:$0xff]  }
  0x7f   :  { %853 = vmatprep.mubr.bf16.mxu0 %v5178_v2  ;;  %3406 = vmatprep.subr.bf16.mxu1 %v3631_v21 }
  0x80   :  { %3407 = vmatpush3.bf16.msra.mxu1 %v3631_v21 }
  0x81   :  { %3408 = vmatprep.subr.bf16.mxu1 %v3632_v41 }
  0x84   :  { %3409 = vmatpush3.bf16.msra.mxu1 %v3632_v41 }
  0x86   :  { %3127 = vmatmul.mubr.msk.bf16.gmra.mrb[20].mxu0 %vm332_vm0, %v307_v8  ;;  %vm4312_vm0 = vcmp.ge.s32.totalorder %v45_v36, 2 }
  0x87   :  { %2194 = vmatprep.mubr.bf16.mxu0 %v5178_v2 }
  0xd9   :  { %v4108_v3 = vpop.f32.mrb[0].mxu1 }
  0xda   :  { %v4110_v25 = vpop.f32.mrb[1].mxu1 }
  0xdb   :  { %v4112_v10 = vpop.f32.mrb[2].mxu1 }
  0xdc   :  { %v4114_v32 = vpop.f32.mrb[3].mxu1 }
 0x111   :  { %v4128_v27 = vpop.f32.mrb[4].mxu1 }
 0x112   :  { %v4130_v28 = vpop.f32.mrb[5].mxu1 }
 0x113   :  { %v4132_v4 = vpop.f32.mrb[6].mxu1 }
 0x114   :  { %v4134_v26 = vpop.f32.mrb[7].mxu1 }
 0x119   :  { %v3392_v12 = vpop.f32.mrb[8].mxu1 }
 0x11a   :  { %v914_v45 = vpop.f32.mrb[9].mxu1 }
 0x11b   :  { %v3393_v19 = vpop.f32.mrb[10].mxu1 }
 0x11c   :  { %v917_v20 = vpop.f32.mrb[11].mxu1 }
 0x121   :  { %v4136_v44 = vpop.f32.mrb[12].mxu1 }
 0x122   :  { %v930_v6 = vpop.f32.mrb[13].mxu1 }
 0x123   :  { %v4138_v48 = vpop.f32.mrb[14].mxu1 }
 0x124   :  { %v933_v13 = vpop.f32.mrb[15].mxu1 }
 0x131   :  { %v805_v30 = vpop.f32.mrb[0].mxu0 }
 0x132   :  { %v4140_v33 = vpop.f32.mrb[1].mxu0 }
 0x133   :  { %v809_v34 = vpop.f32.mrb[2].mxu0 }
 0x134   :  { %v4142_v17 = vpop.f32.mrb[3].mxu0 }
 0x139   :  { %v815_v16 = vpop.f32.mrb[4].mxu0 }
 0x13a   :  { %v817_v37 = vpop.f32.mrb[5].mxu0 }
 0x13b   :  { %v981_v50 = vadd.f32 %v817_v37, %v805_v30  ;;  %v819_v58 = vpop.f32.mrb[6].mxu0 }
 0x13c   :  { %v821_v59 = vpop.f32.mrb[7].mxu0 }
 0x13d   :  { %v993_v29 = vadd.f32 %v981_v50, %v914_v45  ;;  %v982_v60 = vadd.f32 %v821_v59, %v809_v34  ;;  %v3633_v59 = vld [vmem:[%s5173_s2 + $0x70] sm:$0xff]  }
 0x13e   :  { %3410 = vmatprep.subr.bf16.mxu1 %v3633_v59 }
 0x13f   :  { %v994_v7 = vadd.f32 %v982_v60, %v917_v20  ;;  %v1011_v39 = vadd.f32 %v4147_v23, %v993_v29  ;;  %3411 = vmatpush3.bf16.msra.mxu1 %v3633_v59 }
 0x141   :  { %v1012_v31 = vadd.f32 %v4147_v23, %v994_v7  ;;  %v825_v18 = vpop.f32.mrb[8].mxu0  ;;  %v1023_v8 = vmax.f32 %v1011_v39, 0.0  ;;  %v3634_v39 = vld [vmem:[%s5173_s2 + $0x78] sm:$0xff]  }
 0x142   :  { %v827_v5 = vpop.f32.mrb[9].mxu0  ;;  %3412 = vmatprep.subr.bf16.mxu1 %v3634_v39 }
 0x143   :  { %v1024_v47 = vmax.f32 %v1012_v31, 0.0  ;;  %v983_v0 = vadd.f32 %v827_v5, %v815_v16  ;;  %v829_v45 = vpop.f32.mrb[10].mxu0  ;;  %v4157_v37 = vrot.slane %v1023_v8, 1  ;;  %3413 = vmatpush3.bf16.msra.mxu1 %v3634_v39 }
 0x144   :  { %v831_v30 = vpop.f32.mrb[11].mxu0 }
 0x145   :  { %v995_v20 = vadd.f32 %v3392_v12, %v983_v0  ;;  %v984_v34 = vadd.f32 %v831_v30, %v819_v58  ;;  %v1036_v50 = vrot.slane %v1024_v47, 1 }
 0x147   :  { %v1013_v29 = vadd.f32 %v4147_v23, %v995_v20  ;;  %v996_v60 = vadd.f32 %v3393_v19, %v984_v34  ;;  %v1057_v16 = vsel %vm277_vm9, %v4157_v37, %v1036_v50 }
 0x148   :  { %v4166_v21 = vmax.f32 %v1023_v8, %v1057_v16 }
 0x149   :  { %v1025_v12 = vmax.f32 %v1013_v29, 0.0  ;;  %v1014_v58 = vadd.f32 %v4147_v23, %v996_v60  ;;  %v835_v7 = vpop.f32.mrb[12].mxu0  ;;  %v4181_v60 = vld [vmem:[%s5173_s2] sm:$0xff]  }
 0x14a   :  { %v837_v31 = vpop.f32.mrb[13].mxu0  ;;  %1071 = vrot.lane.b32.xlu0 %v4166_v21, %s3693_s7  ;;  %3426 = vmatprep.subr.bf16.mxu1 %v4181_v60 }
 0x14b   :  { %v1037_v19 = vrot.slane %v1025_v12, 1  ;;  %v1026_v41 = vmax.f32 %v1014_v58, 0.0  ;;  %v985_v5 = vadd.f32 %v837_v31, %v825_v18  ;;  %v839_v0 = vpop.f32.mrb[14].mxu0 }
 0x14c   :  { %v841_v8 = vpop.f32.mrb[15].mxu0 }
 0x14d   :  { %v997_v30 = vadd.f32 %v985_v5, %v930_v6  ;;  %v986_v20 = vadd.f32 %v841_v8, %v829_v45  ;;  %v1056_v34 = vsel %vm277_vm9, %v1036_v50, %v1037_v19  ;;  %v1038_v59 = vrot.slane %v1026_v41, 1 }
 0x14e   :  { %v4176_v29 = vmax.f32 %v1024_v47, %v1056_v34 }
 0x14f   :  { %v1015_v16 = vadd.f32 %v4147_v23, %v997_v30  ;;  %v998_v18 = vadd.f32 %v986_v20, %v933_v13  ;;  %v1055_v58 = vsel %vm277_vm9, %v1037_v19, %v1038_v59 }
 0x150   :  { %1073 = vrot.lane.b32.xlu0 %v4176_v29, %s3693_s7  ;;  %v4188_v6 = vmax.f32 %v1025_v12, %v1055_v58 }
 0x151   :  { %v1027_v47 = vmax.f32 %v1015_v16, 0.0  ;;  %v1016_v45 = vadd.f32 %v4147_v23, %v998_v18  ;;  %v845_v50 = vpop.f32.mrb[16].mxu0 }
 0x152   :  { %v847_v39 = vpop.f32.mrb[17].mxu0  ;;  %1075 = vrot.lane.b32.xlu1 %v4188_v6, %s3693_s7 }
 0x153   :  { %v1039_v31 = vrot.slane %v1027_v47, 1  ;;  %v1028_v13 = vmax.f32 %v1016_v45, 0.0  ;;  %v987_v5 = vadd.f32 %v847_v39, %v835_v7  ;;  %v849_v8 = vpop.f32.mrb[18].mxu0 }
 0x154   :  { %v851_v19 = vpop.f32.mrb[19].mxu0 }
 0x155   :  { %v1040_v30 = vrot.slane %v1028_v13, 1  ;;  %v999_v20 = vadd.f32 %v4136_v44, %v987_v5  ;;  %v988_v12 = vadd.f32 %v851_v19, %v839_v0  ;;  %v1054_v34 = vsel %vm277_vm9, %v1038_v59, %v1039_v31 }
 0x156   :  { %v4197_v16 = vmax.f32 %v1026_v41, %v1054_v34 }
 0x157   :  { %v1017_v18 = vadd.f32 %v4147_v23, %v999_v20  ;;  %v1000_v58 = vadd.f32 %v4138_v48, %v988_v12  ;;  %v1053_v2 = vsel %vm277_vm9, %v1039_v31, %v1040_v30 }
 0x158   :  { %1077 = vrot.lane.b32.xlu1 %v4197_v16, %s3693_s7  ;;  %v4205_v7 = vmax.f32 %v1027_v47, %v1053_v2 }
 0x159   :  { %v1029_v45 = vmax.f32 %v1017_v18, 0.0  ;;  %v1018_v44 = vadd.f32 %v4147_v23, %v1000_v58  ;;  %v855_v0 = vpop.f32.mrb[20].mxu0 }
 0x15a   :  { %v3484_v59 = vadd.f32 %v855_v0, %v4108_v3  ;;  %v857_v41 = vpop.f32.mrb[21].mxu0  ;;  %1079 = vrot.lane.b32.xlu0 %v4205_v7, %s3693_s7 }
 0x15b   :  { %v1041_v39 = vrot.slane %v1029_v45, 1  ;;  %v1030_v48 = vmax.f32 %v1018_v44, 0.0  ;;  %v3485_v5 = vadd.f32 %v857_v41, %v4110_v25  ;;  %v859_v31 = vpop.f32.mrb[22].mxu0 }
 0x15c   :  { %v991_v19 = vadd.f32 %v3484_v59, %v4140_v33  ;;  %v3486_v2 = vadd.f32 %v859_v31, %v4112_v10  ;;  %v861_v47 = vpop.f32.mrb[23].mxu0 }
 0x15d   :  { %v1042_v20 = vrot.slane %v1030_v48, 1  ;;  %v989_v12 = vadd.f32 %v3485_v5, %v845_v50  ;;  %v3487_v34 = vadd.f32 %v861_v47, %v4114_v32  ;;  %v1052_v3 = vsel %vm277_vm9, %v1040_v30, %v1041_v39 }
 0x15e   :  { %v1003_v18 = vadd.f32 %v4128_v27, %v991_v19  ;;  %v992_v58 = vadd.f32 %v3486_v2, %v4142_v17  ;;  %v1064_v44 = vmax.f32 %v1028_v13, %v1052_v3 }
 0x15f   :  { %v1001_v25 = vadd.f32 %v989_v12, %v4130_v28  ;;  %v990_v0 = vadd.f32 %v3487_v34, %v849_v8  ;;  %v1051_v33 = vsel %vm277_vm9, %v1041_v39, %v1042_v20 }
 0x160   :  { %v1021_v10 = vadd.f32 %v4147_v23, %v1003_v18  ;;  %v1004_v50 = vadd.f32 %v4132_v4, %v992_v58  ;;  %1081 = vrot.lane.b32.xlu1 %v1064_v44, %s3693_s7  ;;  %v1065_v32 = vmax.f32 %v1029_v45, %v1051_v33 }
 0x161   :  { %v1019_v30 = vadd.f32 %v4147_v23, %v1001_v25  ;;  %v1002_v27 = vadd.f32 %v990_v0, %v4134_v26 }
 0x162   :  { %v1033_v59 = vmax.f32 %v1021_v10, 0.0  ;;  %v1022_v17 = vadd.f32 %v4147_v23, %v1004_v50  ;;  %1083 = vrot.lane.b32.xlu0 %v1065_v32, %s3693_s7 }
 0x163   :  { %v1031_v28 = vmax.f32 %v1019_v30, 0.0  ;;  %v1020_v13 = vadd.f32 %v4147_v23, %v1002_v27 }
 0x164   :  { %v1034_v8 = vmax.f32 %v1022_v17, 0.0  ;;  %v1045_v5 = vrot.slane %v1033_v59, 1 }
 0x165   :  { %v1043_v41 = vrot.slane %v1031_v28, 1  ;;  %v1032_v39 = vmax.f32 %v1020_v13, 0.0 }
 0x166   :  { %v1046_v4 = vrot.slane %v1034_v8, 1 }
 0x167   :  { %v1044_v31 = vrot.slane %v1032_v39, 1  ;;  %v1050_v45 = vsel %vm277_vm9, %v1042_v20, %v1043_v41 }
 0x168   :  { %v1066_v19 = vmax.f32 %v1030_v48, %v1050_v45  ;;  %v1047_v26 = vsel %vm277_vm9, %v1045_v5, %v1046_v4  ;;  %v1058_v2 = vsel %vm277_vm9, %v1046_v4, %v4157_v37 }
 0x169   :  { %v1049_v23 = vsel %vm277_vm9, %v1043_v41, %v1044_v31  ;;  %v1048_v47 = vsel %vm277_vm9, %v1044_v31, %v1045_v5  ;;  %v1069_v12 = vmax.f32 %v1033_v59, %v1047_v26  ;;  %v1070_v34 = vmax.f32 %v1034_v8, %v1058_v2  ;;  %v3640_v41 = vld [vmem:[%s5173_s2 + $0x28] sm:$0xff]  }
 0x16a   :  { %1085 = vrot.lane.b32.xlu1 %v1066_v19, %s3693_s7  ;;  %v1067_v3 = vmax.f32 %v1031_v28, %v1049_v23  ;;  %v1068_v20 = vmax.f32 %v1032_v39, %v1048_v47  ;;  %v3639_v28 = vld [vmem:[%s5173_s2 + $0x20] sm:$0xff]   ;;  %vm168_vm9 = vcmp.lt.s32.totalorder %v48_v43, 14 }
 0x16b   :  { %v3075_v55 = vsel %vm168_vm9, 1.0, %v3692_v46 }
 0x16c   :  { %1087 = vrot.lane.b32.xlu0 %v1067_v3, %s3693_s7 }
 0x16e   :  { %1089 = vrot.lane.b32.xlu1 %v1068_v20, %s3693_s7 }
 0x170   :  { %1091 = vrot.lane.b32.xlu0 %v1069_v12, %s3693_s7 }
 0x172   :  { %1093 = vrot.lane.b32.xlu1 %v1070_v34, %s3693_s7 }
 0x1bc   :  { %v1072_v37 = vpop.permute.xlu0 %1071 }
 0x1bd   :  { %v4247_v18 = vmax.f32 %v4166_v21, %v1072_v37  ;;  %v3636_v21 = vld [vmem:[%s5173_s2 + $0x8] sm:$0xff]  }
 0x1c2   :  { %v1074_v48 = vpop.permute.xlu0 %1073 }
 0x1c3   :  { %v4250_v58 = vmax.f32 %v4176_v29, %v1074_v48 }
 0x1c4   :  { %v1076_v0 = vpop.permute.xlu1 %1075 }
 0x1c5   :  { %v1150_v25 = vpack.c.bf16 %v4250_v58, %v4247_v18  ;;  %v4255_v10 = vmax.f32 %v4188_v6, %v1076_v0  ;;  %v3637_v6 = vld [vmem:[%s5173_s2 + $0x10] sm:$0xff]  }
 0x1c7   :  { %3414 = vmatprep.mubr.bf16.mxu1 %v1150_v25  ;;  %v1109_v35 = vrot.slane %v4255_v10, 6 }
 0x1ca   :  { %v1078_v33 = vpop.permute.xlu1 %1077 }
 0x1cb   :  { %v4258_v50 = vmax.f32 %v4197_v16, %v1078_v33 }
 0x1cc   :  { %v1080_v29 = vpop.permute.xlu0 %1079 }
 0x1cd   :  { %v1151_v30 = vpack.c.bf16 %v4258_v50, %v4255_v10  ;;  %v4270_v16 = vmax.f32 %v4205_v7, %v1080_v29  ;;  %v1110_v22 = vrot.slane %v4258_v50, 6 }
 0x1cf   :  { %3415 = vmatmul.mubr.bf16.vlgmr.msra.gmra.mrb[16].mxu1 %v1151_v30  ;;  %v1111_v48 = vrot.slane %v4270_v16, 6  ;;  %v3643_v30 = vld [vmem:[%s5173_s2 + $0x80] sm:$0xff]  }
 0x1d0   :  { %3427 = vmatpush3.bf16.msra.mxu1 %v4181_v60  ;;  %v3638_v60 = vld [vmem:[%s5173_s2 + $0x18] sm:$0xff]  }
 0x1d1   :  { %3428 = vmatprep.subr.bf16.mxu1 %v3636_v21 }
 0x1d2   :  { %v1082_v27 = vpop.permute.xlu1 %1081 }
 0x1d3   :  { %v4272_v59 = vmax.f32 %v1064_v44, %v1082_v27  ;;  %v1127_v27 = vsel %vm1119_vm1, %v1110_v22, %v1111_v48 }
 0x1d4   :  { %3429 = vmatpush3.bf16.msra.mxu1 %v3636_v21  ;;  %v1084_v7 = vpop.permute.xlu0 %1083  ;;  %v3068_v21 = vsel %vm4312_vm0, 1.0, %v3692_v46 }
 0x1d5   :  { %v1152_v17 = vpack.c.bf16 %v4272_v59, %v4270_v16  ;;  %3430 = vmatprep.subr.bf16.mxu1 %v3637_v6  ;;  %v4282_v44 = vmax.f32 %v1065_v32, %v1084_v7  ;;  %v3641_v32 = vld [vmem:[%s5173_s2 + $0x30] sm:$0xff]   ;;  %v1112_v36 = vrot.slane %v4272_v59, 6 }
 0x1d7   :  { %3418 = vmatprep.mubr.bf16.mxu1 %v1152_v17  ;;  %v1128_v17 = vsel %vm1119_vm1, %v1109_v35, %v1110_v22  ;;  %v3646_v22 = vld [vmem:[%s5173_s2 + $0x98] sm:$0xff]  }
 0x1d8   :  { %3431 = vmatpush3.bf16.msra.mxu1 %v3637_v6  ;;  %v3069_v6 = vsel %vm131_vm2, 1.0, %v3692_v46 }
 0x1d9   :  { %3432 = vmatprep.subr.bf16.mxu1 %v3638_v60 }
 0x1dc   :  { %v1086_v13 = vpop.permute.xlu1 %1085  ;;  %3433 = vmatpush3.bf16.msra.mxu1 %v3638_v60 }
 0x1dd   :  { %v4284_v8 = vmax.f32 %v1066_v19, %v1086_v13  ;;  %3434 = vmatprep.subr.bf16.mxu1 %v3639_v28  ;;  %v1126_v13 = vsel %vm1119_vm1, %v1111_v48, %v1112_v36  ;;  %v1157_v48 = vrot.slane %v4250_v58, 2 }
 0x1de   :  { %v1088_v39 = vpop.permute.xlu0 %1087 }
 0x1df   :  { %v1153_v5 = vpack.c.bf16 %v4284_v8, %v4282_v44  ;;  %v4291_v31 = vmax.f32 %v1067_v3, %v1088_v39  ;;  %v3642_v3 = vld [vmem:[%s5173_s2 + $0x38] sm:$0xff]   ;;  %v1136_v39 = vmul.f32 %v3069_v6, %v1127_v27  ;;  %v1162_v27 = vrot.slane %v4282_v44, 2 }
 0x1e0   :  { %v1090_v4 = vpop.permute.xlu1 %1089  ;;  %3435 = vmatpush3.bf16.msra.mxu1 %v3639_v28 }
 0x1e1   :  { %v4293_v45 = vmax.f32 %v1068_v20, %v1090_v4  ;;  %3419 = vmatmul.mubr.bf16.gmra.mrb[20].mxu1 %v1153_v5  ;;  %3436 = vmatprep.subr.bf16.mxu1 %v3640_v41  ;;  %v1107_v20 = vrot.slane %v4247_v18, 6  ;;  %v1115_v7 = vrot.slane %v4291_v31, 6  ;;  %v1114_v4 = vrot.slane %v4284_v8, 6 }
 0x1e2   :  { %v1092_v19 = vpop.permute.xlu0 %1091  ;;  %v1164_v43 = vrot.slane %v4291_v31, 2 }
 0x1e3   :  { %v1154_v26 = vpack.c.bf16 %v4293_v45, %v4291_v31  ;;  %v4302_v23 = vmax.f32 %v1069_v12, %v1092_v19  ;;  %v3067_v12 = vsel %vm127_vm15, 1.0, %v3692_v46  ;;  %v1146_v19 = vpack.c.bf16 %v1126_v13, %v1136_v39 }
 0x1e4   :  { %v1094_v2 = vpop.permute.xlu1 %1093  ;;  %3437 = vmatpush3.bf16.msra.mxu1 %v3640_v41  ;;  %v1113_v41 = vrot.slane %v4282_v44, 6  ;;  %v1123_v53 = vsel %vm1119_vm1, %v1114_v4, %v1115_v7  ;;  %v1163_v13 = vrot.slane %v4284_v8, 2 }
 0x1e5   :  { %v4304_v47 = vmax.f32 %v1070_v34, %v1094_v2  ;;  %3422 = vmatprep.mubr.bf16.mxu1 %v1154_v26  ;;  %3438 = vmatprep.subr.bf16.mxu1 %v3641_v32  ;;  %v1108_v34 = vrot.slane %v4250_v58, 6  ;;  %v1116_v26 = vrot.slane %v4293_v45, 6  ;;  %v3071_v2 = vsel %vm135_vm3, 1.0, %v3692_v46 }
 0x1e6   :  { %v1117_v61 = vrot.slane %v4302_v23, 6  ;;  %v1140_v37 = vmul.f32 %v3071_v2, %v1123_v53  ;;  %v1166_v44 = vrot.slane %v4302_v23, 2  ;;  %v1172_v56 = vsel %vm1168_vm7, %v1163_v13, %v1164_v43 }
 0x1e7   :  { %v1118_v25 = vrot.slane %v4304_v47, 6  ;;  %v1155_v0 = vpack.c.bf16 %v4304_v47, %v4302_v23  ;;  %v1129_v38 = vsel %vm1119_vm1, %v1108_v34, %v1109_v35  ;;  %v1130_v29 = vsel %vm1119_vm1, %v1107_v20, %v1108_v34 }
 0x1e8   :  { %3439 = vmatpush3.bf16.msra.mxu1 %v3641_v32  ;;  %v1134_v28 = vmul.f32 %v3068_v21, %v1129_v38  ;;  %v3644_v32 = vld [vmem:[%s5173_s2 + $0x88] sm:$0xff]   ;;  %v1158_v35 = vrot.slane %v4255_v10, 2  ;;  %v1122_v34 = vsel %vm1119_vm1, %v1115_v7, %v1116_v26  ;;  %v1121_v54 = vsel %vm1119_vm1, %v1116_v26, %v1117_v61 }
 0x1e9   :  { %3423 = vmatmul.mubr.bf16.gmra.mrb[24].mxu1 %v1155_v0  ;;  %3440 = vmatprep.subr.bf16.mxu1 %v3642_v3  ;;  %v1131_v33 = vsel %vm1119_vm1, %v1118_v25, %v1107_v20  ;;  %v1124_v20 = vsel %vm1119_vm1, %v1113_v41, %v1114_v4  ;;  %v1148_v10 = vpack.c.bf16 %v1122_v34, %v1140_v37  ;;  %v1156_v21 = vrot.slane %v4247_v18, 2  ;;  %v1790_v37 = vld [vmem:[%s5174_s3 + $0x60] sm:$0xff] }
 0x1ea   :  { %v1132_v51 = vmul.f32 %v3067_v12, %v1131_v33  ;;  %v1145_v5 = vpack.c.bf16 %v1128_v17, %v1134_v28  ;;  %v1178_v63 = vsel %vm1168_vm7, %v1157_v48, %v1158_v35  ;;  %v1120_v33 = vsel %vm1119_vm1, %v1117_v61, %v1118_v25  ;;  %v3649_v25 = vld [vmem:[%s5173_s2 + $0xb0] sm:$0xff]   ;;  %v3650_v28 = vld [vmem:[%s5173_s2 + $0xb8] sm:$0xff]  }
 0x1eb   :  { %v1160_v18 = vrot.slane %v4270_v16, 2  ;;  %v1159_v17 = vrot.slane %v4258_v50, 2  ;;  %v3074_v16 = vsel %vm166_vm8, 1.0, %v3692_v46  ;;  %v3076_v23 = vsel %vm170_vm10, 1.0, %v3692_v46 }
 0x1ec   :  { %3441 = vmatpush3.bf16.msra.mxu1 %v3642_v3  ;;  %v1144_v60 = vpack.c.bf16 %v1130_v29, %v1132_v51  ;;  %v1125_v3 = vsel %vm1119_vm1, %v1112_v36, %v1113_v41  ;;  %v3072_v36 = vsel %vm137_vm5, 1.0, %v3692_v46  ;;  %v1179_v51 = vsel %vm1168_vm7, %v1156_v21, %v1157_v48  ;;  %v3648_v29 = vld [vmem:[%s5173_s2 + $0xa8] sm:$0xff]  }
 0x1ed   :  { %3454 = vmatprep.subr.bf16.mxu1 %v3643_v30  ;;  %v1138_v12 = vmul.f32 %v3070_v62, %v1125_v3  ;;  %v1142_v58 = vmul.f32 %v3072_v36, %v1121_v54  ;;  %v1176_v42 = vsel %vm1168_vm7, %v1159_v17, %v1160_v18  ;;  %v1177_v7 = vsel %vm1168_vm7, %v1158_v35, %v1159_v17  ;;  %v1778_v3 = vld [vmem:[%s5174_s3] sm:$0xff]  ;;  %v1779_v48 = vld [vmem:[%s5174_s3 + $0x8] sm:$0xff] }
 0x1ee   :  { %3442 = vmatprep.mubr.bf16.mxu1 %v1144_v60  ;;  %v1161_v60 = vrot.slane %v4272_v59, 2  ;;  %v1184_v24 = vmul.f32 %v3074_v16, %v1176_v42  ;;  %v1165_v41 = vrot.slane %v4293_v45, 2  ;;  %v1188_v1 = vmul.f32 %v3076_v23, %v1172_v56  ;;  %v1794_v35 = vld [vmem:[%s5174_s3 + $0x80] sm:$0xff]  ;;  %v1791_v54 = vld [vmem:[%s5174_s3 + $0x68] sm:$0xff] }
 0x1ef   :  { %v1147_v0 = vpack.c.bf16 %v1124_v20, %v1138_v12  ;;  %v1149_v38 = vpack.c.bf16 %v1120_v33, %v1142_v58  ;;  %v1167_v11 = vrot.slane %v4304_v47, 2  ;;  %v1173_v4 = vsel %vm1168_vm7, %v1162_v27, %v1163_v13  ;;  %v1798_v12 = vld [vmem:[%s5174_s3 + $0xa0] sm:$0xff]  ;;  %v1799_v58 = vld [vmem:[%s5174_s3 + $0xa8] sm:$0xff] }
 0x1f0   :  { %v1174_v50 = vsel %vm1168_vm7, %v1161_v60, %v1162_v27  ;;  %v1194_v39 = vpack.c.bf16 %v1184_v24, %v1177_v7  ;;  %v1175_v31 = vsel %vm1168_vm7, %v1160_v18, %v1161_v60  ;;  %v1170_v8 = vsel %vm1168_vm7, %v1165_v41, %v1166_v44  ;;  %v1810_v17 = vld [vmem:[%s5174_s3 + $0x100] sm:$0xff]  ;;  %v1811_v42 = vld [vmem:[%s5174_s3 + $0x108] sm:$0xff] }
 0x1f1   :  { %3443 = vmatmul.mubr.bf16.vlgmr.msra.gmra.mrb[16].mxu1 %v1145_v5  ;;  %v1186_v59 = vmul.f32 %v3075_v55, %v1174_v50  ;;  %v1190_v45 = vmul.f32 %v3077_v49, %v1170_v8  ;;  %v3078_v2 = vsel %vm174_vm12, 1.0, %v3692_v46  ;;  %v1180_v53 = vsel %vm1168_vm7, %v1167_v11, %v1156_v21  ;;  %v1782_v46 = vld [vmem:[%s5174_s3 + $0x20] sm:$0xff]  ;;  %v1815_v55 = vld [vmem:[%s5174_s3 + $0x128] sm:$0xff] }
 0x1f2   :  { %3455 = vmatpush3.bf16.msra.mxu1 %v3643_v30  ;;  %3446 = vmatprep.mubr.bf16.mxu1 %v1146_v19  ;;  %v1182_v30 = vmul.f32 %v3073_v57, %v1178_v63  ;;  %v1171_v19 = vsel %vm1168_vm7, %v1164_v43, %v1165_v41  ;;  %v1192_v47 = vmul.f32 %v3078_v2, %v1180_v53  ;;  %v5188_v62 = vmov 0   ;;  %v1802_v21 = vld [vmem:[%s5174_s3 + $0xc0] sm:$0xff]  ;;  %v1819_v13 = vld [vmem:[%s5174_s3 + $0x148] sm:$0xff] }
 0x1f3   :  { %3456 = vmatprep.subr.bf16.mxu1 %v3644_v32  ;;  %v1195_v5 = vpack.c.bf16 %v1186_v59, %v1175_v31  ;;  %v1197_v26 = vpack.c.bf16 %v1190_v45, %v1171_v19  ;;  %v1169_v14 = vsel %vm1168_vm7, %v1166_v44, %v1167_v11  ;;  %v3160_v61 = vcombine.low %v1778_v3, %v1782_v46  ;;  %v1814_v60 = vld [vmem:[%s5174_s3 + $0x120] sm:$0xff]  ;;  %v1823_v41 = vld [vmem:[%s5174_s3 + $0x168] sm:$0xff] }
 0x1f4   :  { %v1193_v6 = vpack.c.bf16 %v1182_v30, %v1179_v51  ;;  %v1198_v40 = vpack.c.bf16 %v1192_v47, %v1169_v14  ;;  %v3161_v20 = vcombine.high %v1778_v3, %v1782_v46  ;;  %v3177_v33 = vcombine.high %v1794_v35, %v1798_v12  ;;  %v1818_v43 = vld [vmem:[%s5174_s3 + $0x140] sm:$0xff]  ;;  %v1827_v8 = vld [vmem:[%s5174_s3 + $0x188] sm:$0xff] }
 0x1f5   :  { %v3193_v50 = vcombine.high %v1810_v17, %v1814_v60  ;;  %v1822_v59 = vld [vmem:[%s5174_s3 + $0x160] sm:$0xff]  ;;  %v3195_v44 = vcombine.high %v1811_v42, %v1815_v55  ;;  %v3192_v7 = vcombine.low %v1810_v17, %v1814_v60  ;;  %v3194_v31 = vcombine.low %v1811_v42, %v1815_v55 }
 0x1f6   :  { %3457 = vmatpush3.bf16.msra.mxu1 %v3644_v32  ;;  %v1196_v32 = vpack.c.bf16 %v1188_v1, %v1173_v4  ;;  %2162 = vmatprep.subr.bf16.mxu0 %v3161_v20  ;;  %v1830_v23 = vld [vmem:[%s5174_s3 + $0x1a0] sm:$0xff]  ;;  %v3203_v56 = vcombine.high %v1819_v13, %v1823_v41  ;;  %v3200_v49 = vcombine.low %v1818_v43, %v1822_v59  ;;  %v1831_v1 = vld [vmem:[%s5174_s3 + $0x1a8] sm:$0xff] }
 0x1f7   :  { %3458 = vmatprep.subr.bf16.mxu1 %v3645_v52  ;;  %2163 = vmatpush1.bf16.msra.mxu0 %v3160_v61  ;;  %v3202_v45 = vcombine.low %v1819_v13, %v1823_v41  ;;  %v3211_v4 = vcombine.high %v1827_v8, %v1831_v1  ;;  %v3210_v19 = vcombine.low %v1827_v8, %v1831_v1 }
 0x1f9   :  { %3447 = vmatmul.mubr.bf16.gmra.mrb[20].mxu1 %v1147_v0  ;;  %v1783_v0 = vld [vmem:[%s5174_s3 + $0x28] sm:$0xff] }
 0x1fa   :  { %3459 = vmatpush3.bf16.msra.mxu1 %v3645_v52  ;;  %3450 = vmatprep.mubr.bf16.mxu1 %v1148_v10  ;;  %v1786_v52 = vld [vmem:[%s5174_s3 + $0x40] sm:$0xff]  ;;  %v3162_v10 = vcombine.low %v1779_v48, %v1783_v0  ;;  %v3163_v36 = vcombine.high %v1779_v48, %v1783_v0 }
 0x1fb   :  { %3460 = vmatprep.subr.bf16.mxu1 %v3646_v22  ;;  %v3169_v34 = vcombine.high %v1786_v52, %v1790_v37  ;;  %v3168_v57 = vcombine.low %v1786_v52, %v1790_v37  ;;  %v1834_v0 = vld [vmem:[%s5174_s3 + $0x1c0] sm:$0xff] }
 0x1fd   :  { %2164 = vmatprep.subr.bf16.mxu0 %v3169_v34 }
 0x1fe   :  { %3461 = vmatpush3.bf16.msra.mxu1 %v3646_v22  ;;  %v1787_v22 = vld [vmem:[%s5174_s3 + $0x48] sm:$0xff]  ;;  %2165 = vmatpush1.bf16.msra.mxu0 %v3168_v57 }
 0x1ff   :  { %3462 = vmatprep.subr.bf16.mxu1 %v3647_v9  ;;  %v3171_v63 = vcombine.high %v1787_v22, %v1791_v54  ;;  %v3170_v30 = vcombine.low %v1787_v22, %v1791_v54  ;;  %2166 = vmatprep.subr.bf16.mxu0 %v3177_v33  ;;  %v1838_v22 = vld [vmem:[%s5174_s3 + $0x1e0] sm:$0xff] }
 0x201   :  { %3451 = vmatmul.mubr.bf16.gmra.mrb[24].mxu1 %v1149_v38  ;;  %v1806_v38 = vld [vmem:[%s5174_s3 + $0xe0] sm:$0xff] }
 0x202   :  { %3463 = vmatpush3.bf16.msra.mxu1 %v3647_v9  ;;  %3470 = vmatprep.mubr.bf16.mxu1 %v1193_v6  ;;  %v1795_v9 = vld [vmem:[%s5174_s3 + $0x88] sm:$0xff]  ;;  %v3185_v18 = vcombine.high %v1802_v21, %v1806_v38  ;;  %v3184_v16 = vcombine.low %v1802_v21, %v1806_v38  ;;  %v3216_v38 = vcombine.low %v1834_v0, %v1838_v22 }
 0x203   :  { %3464 = vmatprep.subr.bf16.mxu1 %v3648_v29  ;;  %v3179_v51 = vcombine.high %v1795_v9, %v1799_v58  ;;  %v1803_v6 = vld [vmem:[%s5174_s3 + $0xc8] sm:$0xff]  ;;  %v3178_v27 = vcombine.low %v1795_v9, %v1799_v58  ;;  %v3217_v9 = vcombine.high %v1834_v0, %v1838_v22 }
 0x204   :  { %v1839_v58 = vld [vmem:[%s5174_s3 + $0x1e8] sm:$0xff] }
 0x206   :  { %3465 = vmatpush3.bf16.msra.mxu1 %v3648_v29  ;;  %v3176_v29 = vcombine.low %v1794_v35, %v1798_v12 }
 0x207   :  { %3466 = vmatprep.subr.bf16.mxu1 %v3649_v25 }
 0x208   :  { %2167 = vmatpush1.bf16.msra.mxu0 %v3176_v29 }
 0x209   :  { %2168 = vmatprep.subr.bf16.mxu0 %v3185_v18 }
 0x20a   :  { %3467 = vmatpush3.bf16.msra.mxu1 %v3649_v25  ;;  %v1807_v25 = vld [vmem:[%s5174_s3 + $0xe8] sm:$0xff] }
 0x20b   :  { %3468 = vmatprep.subr.bf16.mxu1 %v3650_v28  ;;  %v3186_v24 = vcombine.low %v1803_v6, %v1807_v25 }
 0x20c   :  { %2169 = vmatpush1.bf16.msra.mxu0 %v3184_v16 }
 0x20d   :  { %2170 = vmatprep.subr.bf16.mxu0 %v3193_v50 }
 0x20e   :  { %3469 = vmatpush3.bf16.msra.mxu1 %v3650_v28  ;;  %v3187_v28 = vcombine.high %v1803_v6, %v1807_v25 }
 0x20f   :  { %2255 = vmatprep.subr.bf16.mxu1 %v3163_v36 }
 0x210   :  { %2171 = vmatpush1.bf16.msra.mxu0 %v3192_v7  ;;  %v4585_v7 = vld [vmem:[%s5174_s3 + $0x38] sm:$0xff] }
 0x211   :  { %3471 = vmatmul.mubr.bf16.vlgmr.msra.gmra.mrb[16].mxu1 %v1194_v39  ;;  %v3201_v39 = vcombine.high %v1818_v43, %v1822_v59 }
 0x212   :  { %3474 = vmatprep.mubr.bf16.mxu1 %v1195_v5  ;;  %2256 = vmatpush1.bf16.msra.mxu1 %v3162_v10  ;;  %v1826_v5 = vld [vmem:[%s5174_s3 + $0x180] sm:$0xff]  ;;  %v1835_v10 = vld [vmem:[%s5174_s3 + $0x1c8] sm:$0xff] }
 0x213   :  { %2257 = vmatprep.subr.bf16.mxu1 %v3171_v63  ;;  %2172 = vmatprep.subr.bf16.mxu0 %v3201_v39  ;;  %v3209_v11 = vcombine.high %v1826_v5, %v1830_v23 }
 0x214   :  { %2173 = vmatpush1.bf16.msra.mxu0 %v3200_v49 }
 0x215   :  { %2174 = vmatprep.subr.bf16.mxu0 %v3209_v11 }
 0x216   :  { %2258 = vmatpush1.bf16.msra.mxu1 %v3170_v30 }
 0x217   :  { %2259 = vmatprep.subr.bf16.mxu1 %v3179_v51  ;;  %v3218_v51 = vcombine.low %v1835_v10, %v1839_v58 }
 0x219   :  { %3475 = vmatmul.mubr.bf16.gmra.mrb[20].mxu1 %v1196_v32  ;;  %v3208_v32 = vcombine.low %v1826_v5, %v1830_v23 }
 0x21a   :  { %3478 = vmatprep.mubr.bf16.mxu1 %v1197_v26  ;;  %2260 = vmatpush1.bf16.msra.mxu1 %v3178_v27  ;;  %v4541_v26 = vld [vmem:[%s5176_s5 + $0x1] ss:$0 sm:$0xff]  ;;  %v3219_v27 = vcombine.high %v1835_v10, %v1839_v58  ;;  %v1780_v10 = vld [vmem:[%s5174_s3 + $0x10] sm:$0xff] }
 0x21b   :  { %2261 = vmatprep.subr.bf16.mxu1 %v3187_v28  ;;  %2175 = vmatpush1.bf16.msra.mxu0 %v3208_v32 }
 0x21c   :  { %2176 = vmatprep.subr.bf16.mxu0 %v3217_v9 }
 0x21e   :  { %2262 = vmatpush1.bf16.msra.mxu1 %v3186_v24 }
 0x21f   :  { %2263 = vmatprep.subr.bf16.mxu1 %v3195_v44  ;;  %2177 = vmatpush1.bf16.msra.mxu0 %v3216_v38  ;;  %v4580_v44 = vld [vmem:[%s5174_s3 + $0x18] sm:$0xff] }
 0x220   :  { %v3166_v11 = vcombine.low %v4580_v44, %v4585_v7 }
 0x221   :  { %3479 = vmatmul.mubr.bf16.gmra.mrb[24].mxu1 %v1198_v40 }
 0x222   :  { %2287 = vmatprep.mubr.bf16.mxu1 %v5188_v62  ;;  %2264 = vmatpush1.bf16.msra.mxu1 %v3194_v31 }
 0x223   :  { %2265 = vmatprep.subr.bf16.mxu1 %v3203_v56 }
 0x226   :  { %2266 = vmatpush1.bf16.msra.mxu1 %v3202_v45  ;;  %v3167_v45 = vcombine.high %v4580_v44, %v4585_v7  ;;  %v1805_v44 = vld [vmem:[%s5174_s3 + $0xd8] sm:$0xff] }
 0x227   :  { %2267 = vmatprep.subr.bf16.mxu1 %v3211_v4  ;;  %v1809_v7 = vld [vmem:[%s5174_s3 + $0xf8] sm:$0xff] }
 0x22a   :  { %2268 = vmatpush1.bf16.msra.mxu1 %v3210_v19 }
 0x22b   :  { %2269 = vmatprep.subr.bf16.mxu1 %v3219_v27 }
 0x22e   :  { %2270 = vmatpush1.bf16.msra.mxu1 %v3218_v51 }
 0x22f   :  { %2441 = vmatprep.subr.bf16.mxu1 %v3167_v45 }
 0x2e4   :  { %v3472_v2 = vpop.f32.mrb[16].mxu1 }
 0x2e5   :  { %v1654_v53 = vadd.f32 %v3472_v2, %v4541_v26  ;;  %v1587_v47 = vpop.f32.mrb[17].mxu1 }
 0x2e6   :  { %v1652_v14 = vadd.f32 %v4541_v26, %v1587_v47  ;;  %v3473_v40 = vpop.f32.mrb[18].mxu1 }
 0x2e7   :  { %vm1666_vm13 = vcmp.ge.f32.partialorder %v1654_v53, 0.0  ;;  %v1678_v3 = vmul.f32 0.1, %v1654_v53  ;;  %v1655_v46 = vadd.f32 %v3473_v40, %v4541_v26  ;;  %v1590_v52 = vpop.f32.mrb[19].mxu1 }
 0x2e8   :  { %vm1664_vm14 = vcmp.ge.f32.partialorder %v1652_v14, 0.0  ;;  %v1676_v61 = vmul.f32 0.1, %v1652_v14  ;;  %v1653_v20 = vadd.f32 %v4541_v26, %v1590_v52 }
 0x2e9   :  { %v1690_v37 = vsel %vm1666_vm13, %v1654_v53, %v1678_v3  ;;  %vm1667_vm15 = vcmp.ge.f32.partialorder %v1655_v46, 0.0  ;;  %v1679_v35 = vmul.f32 0.1, %v1655_v46 }
 0x2ea   :  { %vm1665_vm0 = vcmp.ge.f32.partialorder %v1653_v20, 0.0  ;;  %v1677_v12 = vmul.f32 0.1, %v1653_v20  ;;  %v4547_v34 = vsel %vm1664_vm14, %v1652_v14, %v1676_v61  ;;  %v1702_v36 = vrot.slane %v1690_v37, 2 }
 0x2eb   :  { %v1691_v48 = vsel %vm1667_vm15, %v1655_v46, %v1679_v35  ;;  %v1700_v29 = vrot.slane %v4547_v34, 2 }
 0x2ec   :  { %v1703_v54 = vrot.slane %v1691_v48, 2  ;;  %v1689_v57 = vsel %vm1665_vm0, %v1653_v20, %v1677_v12  ;;  %v3476_v63 = vpop.f32.mrb[20].mxu1 }
 0x2ed   :  { %v1701_v33 = vrot.slane %v1689_v57, 2  ;;  %v1658_v30 = vadd.f32 %v3476_v63, %v4541_v26  ;;  %v1603_v21 = vpop.f32.mrb[21].mxu1 }
 0x2ee   :  { %v1656_v6 = vadd.f32 %v4541_v26, %v1603_v21  ;;  %v3477_v25 = vpop.f32.mrb[22].mxu1  ;;  %v1720_v18 = vsel %vm1168_vm7, %v1702_v36, %v1703_v54 }
 0x2ef   :  { %vm1670_vm1 = vcmp.ge.f32.partialorder %v1658_v30, 0.0  ;;  %v1682_v17 = vmul.f32 0.1, %v1658_v30  ;;  %v1659_v60 = vadd.f32 %v3477_v25, %v4541_v26  ;;  %v1606_v28 = vpop.f32.mrb[23].mxu1  ;;  %v1721_v16 = vsel %vm1168_vm7, %v1701_v33, %v1702_v36  ;;  %v1784_v36 = vld [vmem:[%s5174_s3 + $0x30] sm:$0xff] }
 0x2f0   :  { %vm1668_vm2 = vcmp.ge.f32.partialorder %v1656_v6, 0.0  ;;  %v1680_v42 = vmul.f32 0.1, %v1656_v6  ;;  %v1657_v55 = vadd.f32 %v4541_v26, %v1606_v28  ;;  %v1722_v50 = vsel %vm1168_vm7, %v1700_v29, %v1701_v33 }
 0x2f1   :  { %v1694_v24 = vsel %vm1670_vm1, %v1658_v30, %v1682_v17  ;;  %vm1671_vm3 = vcmp.ge.f32.partialorder %v1659_v60, 0.0  ;;  %v1683_v43 = vmul.f32 0.1, %v1659_v60  ;;  %v4575_v59 = vmax.f32 %v4547_v34, %v1722_v50 }
 0x2f2   :  { %v1706_v13 = vrot.slane %v1694_v24, 2  ;;  %v1692_v41 = vsel %vm1668_vm2, %v1656_v6, %v1680_v42  ;;  %vm1669_vm4 = vcmp.ge.f32.partialorder %v1657_v55, 0.0  ;;  %v1681_v39 = vmul.f32 0.1, %v1657_v55 }
 0x2f3   :  { %v1704_v31 = vrot.slane %v1692_v41, 2  ;;  %v1695_v5 = vsel %vm1671_vm3, %v1659_v60, %v1683_v43  ;;  %v4587_v23 = vmax.f32 %v1689_v57, %v1721_v16  ;;  %v4589_v56 = vmax.f32 %v1690_v37, %v1720_v18 }
 0x2f4   :  { %v1707_v49 = vrot.slane %v1695_v5, 2  ;;  %v1693_v8 = vsel %vm1669_vm4, %v1657_v55, %v1681_v39  ;;  %v3480_v1 = vpop.f32.mrb[24].mxu1  ;;  %v3164_v51 = vcombine.low %v1780_v10, %v1784_v36  ;;  %v3165_v27 = vcombine.high %v1780_v10, %v1784_v36 }
 0x2f5   :  { %v1705_v4 = vrot.slane %v1693_v8, 2  ;;  %v3585_v32 = vpack.i.bf16 %v4587_v23, %v4575_v59  ;;  %v1662_v19 = vadd.f32 %v3480_v1, %v4541_v26  ;;  %v1619_v2 = vpop.f32.mrb[25].mxu1  ;;  %v1719_v53 = vsel %vm1168_vm7, %v1703_v54, %v1704_v31 }
 0x2f6   :  { %v1660_v47 = vadd.f32 %v4541_v26, %v1619_v2  ;;  %v3481_v14 = vpop.f32.mrb[26].mxu1  ;;  %v4601_v40 = vmax.f32 %v1691_v48, %v1719_v53  ;;  %v1716_v3 = vsel %vm1168_vm7, %v1706_v13, %v1707_v49  ;;  %2348 = vmatprep.subr.bf16.mxu0 %v3165_v27 }
 0x2f7   :  { %3586 = vrot.lane.b32.xlu0 %v3585_v32, %s3694_s27  ;;  %vm1674_vm5 = vcmp.ge.f32.partialorder %v1662_v19, 0.0  ;;  %v1686_v46 = vmul.f32 0.1, %v1662_v19  ;;  %v1663_v52 = vadd.f32 %v3481_v14, %v4541_v26  ;;  %v1622_v61 = vpop.f32.mrb[27].mxu1  ;;  %v1717_v20 = vsel %vm1168_vm7, %v1705_v4, %v1706_v13  ;;  %v1792_v32 = vld [vmem:[%s5174_s3 + $0x70] sm:$0xff] }
 0x2f8   :  { %vm1672_vm6 = vcmp.ge.f32.partialorder %v1660_v47, 0.0  ;;  %v1684_v37 = vmul.f32 0.1, %v1660_v47  ;;  %v1661_v35 = vadd.f32 %v4541_v26, %v1622_v61  ;;  %v3590_v12 = vpack.i.bf16 %v4601_v40, %v4589_v56 }
 0x2f9   :  { %v1698_v48 = vsel %vm1674_vm5, %v1662_v19, %v1686_v46  ;;  %vm1675_vm8 = vcmp.ge.f32.partialorder %v1663_v52, 0.0  ;;  %v1687_v0 = vmul.f32 0.1, %v1663_v52  ;;  %v1718_v22 = vsel %vm1168_vm7, %v1704_v31, %v1705_v4  ;;  %v1788_v4 = vld [vmem:[%s5174_s3 + $0x50] sm:$0xff] }
 0x2fa   :  { %v1710_v54 = vrot.slane %v1698_v48, 2  ;;  %v1696_v57 = vsel %vm1672_vm6, %v1660_v47, %v1684_v37  ;;  %vm1673_vm9 = vcmp.ge.f32.partialorder %v1661_v35, 0.0  ;;  %v1685_v26 = vmul.f32 0.1, %v1661_v35  ;;  %3591 = vrot.lane.b32.xlu1 %v3590_v12, %s3694_s27  ;;  %v1800_v46 = vld [vmem:[%s5174_s3 + $0xb0] sm:$0xff] }
 0x2fb   :  { %v1708_v63 = vrot.slane %v1696_v57, 2  ;;  %v1699_v9 = vsel %vm1675_vm8, %v1663_v52, %v1687_v0  ;;  %v4621_v58 = vmax.f32 %v1692_v41, %v1718_v22  ;;  %v4623_v33 = vmax.f32 %v1693_v8, %v1717_v20 }
 0x2fc   :  { %v1711_v30 = vrot.slane %v1699_v9, 2  ;;  %v1697_v21 = vsel %vm1673_vm9, %v1661_v35, %v1685_v26  ;;  %v4625_v38 = vmax.f32 %v1694_v24, %v1716_v3  ;;  %v3173_v14 = vcombine.high %v1788_v4, %v1792_v32  ;;  %v1796_v3 = vld [vmem:[%s5174_s3 + $0x90] sm:$0xff]  ;;  %v1813_v26 = vld [vmem:[%s5174_s3 + $0x118] sm:$0xff] }
 0x2fd   :  { %v1709_v6 = vrot.slane %v1697_v21, 2  ;;  %v3595_v25 = vpack.i.bf16 %v4623_v33, %v4621_v58  ;;  %v1715_v18 = vsel %vm1168_vm7, %v1707_v49, %v1708_v63  ;;  %v1793_v49 = vld [vmem:[%s5174_s3 + $0x78] sm:$0xff]  ;;  %v3172_v61 = vcombine.low %v1788_v4, %v1792_v32 }
 0x2fe   :  { %v4631_v17 = vmax.f32 %v1695_v5, %v1715_v18  ;;  %v1712_v60 = vsel %vm1168_vm7, %v1710_v54, %v1711_v30  ;;  %v1723_v28 = vsel %vm1168_vm7, %v1711_v30, %v1700_v29  ;;  %v1789_v5 = vld [vmem:[%s5174_s3 + $0x58] sm:$0xff]  ;;  %v3181_v12 = vcombine.high %v1796_v3, %v1800_v46  ;;  %v1816_v30 = vld [vmem:[%s5174_s3 + $0x130] sm:$0xff] }
 0x2ff   :  { %3596 = vrot.lane.b32.xlu0 %v3595_v25, %s3694_s27  ;;  %v1713_v16 = vsel %vm1168_vm7, %v1709_v6, %v1710_v54  ;;  %v1714_v42 = vsel %vm1168_vm7, %v1708_v63, %v1709_v6  ;;  %v4644_v55 = vmax.f32 %v1698_v48, %v1712_v60  ;;  %v4646_v50 = vmax.f32 %v1699_v9, %v1723_v28  ;;  %v1817_v63 = vld [vmem:[%s5174_s3 + $0x138] sm:$0xff]  ;;  %v1812_v9 = vld [vmem:[%s5174_s3 + $0x110] sm:$0xff] }
 0x300   :  { %v3600_v24 = vpack.i.bf16 %v4631_v17, %v4625_v38  ;;  %v4650_v43 = vmax.f32 %v1696_v57, %v1714_v42  ;;  %v4652_v34 = vmax.f32 %v1697_v21, %v1713_v16  ;;  %v3175_v47 = vcombine.high %v1789_v5, %v1793_v49  ;;  %v1821_v28 = vld [vmem:[%s5174_s3 + $0x158] sm:$0xff] }
 0x301   :  { %v3610_v13 = vpack.i.bf16 %v4646_v50, %v4644_v55  ;;  %v3174_v52 = vcombine.low %v1789_v5, %v1793_v49  ;;  %v3180_v36 = vcombine.low %v1796_v3, %v1800_v46  ;;  %v3191_v54 = vcombine.high %v1805_v44, %v1809_v7  ;;  %v1825_v16 = vld [vmem:[%s5174_s3 + $0x178] sm:$0xff] }
 0x302   :  { %3601 = vrot.lane.b32.xlu1 %v3600_v24, %s3694_s27  ;;  %v3605_v29 = vpack.i.bf16 %v4652_v34, %v4650_v43  ;;  %v3190_v21 = vcombine.low %v1805_v44, %v1809_v7  ;;  %v3199_v18 = vcombine.high %v1813_v26, %v1817_v63  ;;  %v3197_v60 = vcombine.high %v1812_v9, %v1816_v30  ;;  %v1829_v5 = vld [vmem:[%s5174_s3 + $0x198] sm:$0xff] }
 0x303   :  { %v3198_v42 = vcombine.low %v1813_v26, %v1817_v63  ;;  %v1833_v49 = vld [vmem:[%s5174_s3 + $0x1b8] sm:$0xff]  ;;  %v3659_v26 = vld [vmem:[%s5175_s4 + $0x60] sm:$0xff]   ;;  %vm2558_vm7 = vcmp.lt.s32.totalorder %v3787_v15, 4 }
 0x304   :  { %3606 = vrot.lane.b32.xlu0 %v3605_v29, %s3694_s27  ;;  %v3214_v3 = vcombine.low %v1829_v5, %v1833_v49  ;;  %v3660_v63 = vld [vmem:[%s5175_s4 + $0x20] sm:$0xff]  }
 0x306   :  { %3611 = vrot.lane.b32.xlu1 %v3610_v13, %s3694_s27 }
 0x369   :  { %v3587_v41 = vpop.permute.xlu0 %3586 }
 0x36a   :  { %v3589_v39 = vunpack.i.h.bf16 %v3587_v41  ;;  %v3588_v31 = vunpack.i.l.bf16 %v3587_v41  ;;  %v3196_v41 = vcombine.low %v1812_v9, %v1816_v30  ;;  %v3661_v9 = vld [vmem:[%s5175_s4 + $0x68] sm:$0xff]  }
 0x36b   :  { %v3662_v30 = vld [vmem:[%s5175_s4 + $0x28] sm:$0xff]  }
 0x36c   :  { %v1761_v8 = vmax.f32 %v4587_v23, %v3589_v39  ;;  %v1760_v1 = vmax.f32 %v4575_v59, %v3588_v31  ;;  %v3592_v45 = vpop.permute.xlu1 %3591  ;;  %v1797_v23 = vld [vmem:[%s5174_s3 + $0x98] sm:$0xff]  ;;  %v3207_v39 = vcombine.high %v1821_v28, %v1825_v16 }
 0x36d   :  { %v3594_v2 = vunpack.i.h.bf16 %v3592_v45  ;;  %v3593_v53 = vunpack.i.l.bf16 %v3592_v45  ;;  %v1801_v59 = vld [vmem:[%s5174_s3 + $0xb8] sm:$0xff]  ;;  %v3206_v45 = vcombine.low %v1821_v28, %v1825_v16 }
 0x36e   :  { %v4675_v19 = vpack.c.bf16 %v1761_v8, %v1760_v1  ;;  %v3183_v20 = vcombine.high %v1797_v23, %v1801_v59  ;;  %v1828_v8 = vld [vmem:[%s5174_s3 + $0x190] sm:$0xff] }
 0x36f   :  { %v1763_v37 = vmax.f32 %v4601_v40, %v3594_v2  ;;  %v1762_v35 = vmax.f32 %v4589_v56, %v3593_v53  ;;  %v1804_v56 = vld [vmem:[%s5174_s3 + $0xd0] sm:$0xff]  ;;  %v3182_v40 = vcombine.low %v1797_v23, %v1801_v59  ;;  %v1837_v59 = vld [vmem:[%s5174_s3 + $0x1d8] sm:$0xff] }
 0x370   :  { %2195 = vmatmul.mubr.bf16.vlgmr.msra.gmra.mrb[24].mxu0 %v4675_v19  ;;  %2288 = vmatmul.mubr.bf16.vlgmr.msra.gmra.mrb[28].mxu1 %v4675_v19  ;;  %v1832_v1 = vld [vmem:[%s5174_s3 + $0x1b0] sm:$0xff] }
 0x371   :  { %2442 = vmatpush1.bf16.msra.mxu1 %v3166_v11  ;;  %2349 = vmatpush1.bf16.msra.mxu0 %v3164_v51  ;;  %v3597_v48 = vpop.permute.xlu0 %3596  ;;  %v1808_v11 = vld [vmem:[%s5174_s3 + $0xf0] sm:$0xff]  ;;  %v4710_v0 = vpack.c.bf16 %v1763_v37, %v1762_v35  ;;  %v3213_v23 = vcombine.high %v1828_v8, %v1832_v1 }
 0x372   :  { %2443 = vmatprep.subr.bf16.mxu1 %v3175_v47  ;;  %2204 = vmatprep.mubr.bf16.mxu0 %v5188_v62  ;;  %v3599_v22 = vunpack.i.h.bf16 %v3597_v48  ;;  %v3598_v10 = vunpack.i.l.bf16 %v3597_v48  ;;  %v3189_v57 = vcombine.high %v1804_v56, %v1808_v11  ;;  %v3188_v51 = vcombine.low %v1804_v56, %v1808_v11 }
 0x373   :  { %2297 = vmatprep.mubr.bf16.mxu1 %v5188_v62  ;;  %2350 = vmatprep.subr.bf16.mxu0 %v3173_v14  ;;  %v3215_v47 = vcombine.high %v1829_v5, %v1833_v49  ;;  %v1841_v14 = vld [vmem:[%s5174_s3 + $0x1f8] sm:$0xff] }
 0x374   :  { %v1765_v6 = vmax.f32 %v4623_v33, %v3599_v22  ;;  %v1764_v25 = vmax.f32 %v4621_v58, %v3598_v10  ;;  %v3602_v27 = vpop.permute.xlu1 %3601  ;;  %v1820_v58 = vld [vmem:[%s5174_s3 + $0x150] sm:$0xff]  ;;  %v3223_v37 = vcombine.high %v1837_v59, %v1841_v14 }
 0x375   :  { %2444 = vmatpush1.bf16.msra.mxu1 %v3174_v52  ;;  %2351 = vmatpush1.bf16.msra.mxu0 %v3172_v61  ;;  %v1824_v33 = vld [vmem:[%s5174_s3 + $0x170] sm:$0xff]  ;;  %v3604_v29 = vunpack.i.h.bf16 %v3602_v27  ;;  %v3603_v13 = vunpack.i.l.bf16 %v3602_v27 }
 0x376   :  { %2445 = vmatprep.subr.bf16.mxu1 %v3183_v20  ;;  %2352 = vmatprep.subr.bf16.mxu0 %v3181_v12  ;;  %v4742_v24 = vpack.c.bf16 %v1765_v6, %v1764_v25  ;;  %v3205_v31 = vcombine.high %v1820_v58, %v1824_v33  ;;  %v3204_v2 = vcombine.low %v1820_v58, %v1824_v33  ;;  %v3607_v53 = vpop.permute.xlu0 %3606  ;;  %v3665_v6 = vld [vmem:[%s5175_s4 + $0x78] sm:$0xff]  }
 0x377   :  { %v1767_v4 = vmax.f32 %v4631_v17, %v3604_v29  ;;  %v1766_v32 = vmax.f32 %v4625_v38, %v3603_v13  ;;  %v1836_v38 = vld [vmem:[%s5174_s3 + $0x1d0] sm:$0xff]  ;;  %v3609_v52 = vunpack.i.h.bf16 %v3607_v53  ;;  %v3608_v61 = vunpack.i.l.bf16 %v3607_v53  ;;  %v3666_v25 = vld [vmem:[%s5175_s4 + $0x38] sm:$0xff]  }
 0x378   :  { %2205 = vmatmul.mubr.bf16.gmra.mrb[28].mxu0 %v4710_v0  ;;  %2298 = vmatmul.mubr.bf16.gmra.mrb[32].mxu1 %v4710_v0  ;;  %v1840_v17 = vld [vmem:[%s5174_s3 + $0x1f0] sm:$0xff]  ;;  %v3212_v20 = vcombine.low %v1828_v8, %v1832_v1  ;;  %v3222_v12 = vcombine.low %v1837_v59, %v1841_v14  ;;  %v3612_v56 = vpop.permute.xlu1 %3611 }
 0x379   :  { %2446 = vmatpush1.bf16.msra.mxu1 %v3182_v40  ;;  %2214 = vmatprep.mubr.bf16.mxu0 %v5188_v62  ;;  %v1775_v46 = vpack.c.bf16 %v1767_v4, %v1766_v32  ;;  %v3221_v35 = vcombine.high %v1836_v38, %v1840_v17  ;;  %v1769_v48 = vmax.f32 %v4652_v34, %v3609_v52  ;;  %v3614_v40 = vunpack.i.h.bf16 %v3612_v56 }
 0x37a   :  { %2307 = vmatprep.mubr.bf16.mxu1 %v5188_v62  ;;  %2353 = vmatpush1.bf16.msra.mxu0 %v3180_v36  ;;  %v1768_v44 = vmax.f32 %v4650_v43, %v3608_v61  ;;  %v3220_v7 = vcombine.low %v1836_v38, %v1840_v17  ;;  %v3613_v22 = vunpack.i.l.bf16 %v3612_v56  ;;  %v3656_v36 = vld [vmem:[%s5175_s4 + $0x10] sm:$0xff]  }
 0x37b   :  { %2447 = vmatprep.subr.bf16.mxu1 %v3191_v54  ;;  %2354 = vmatprep.subr.bf16.mxu0 %v3189_v57  ;;  %v1771_v34 = vmax.f32 %v4646_v50, %v3614_v40  ;;  %v3652_v50 = vld [vmem:[%s5175_s4] sm:$0xff]   ;;  %v3657_v54 = vld [vmem:[%s5175_s4 + $0x58] sm:$0xff]  }
 0x37c   :  { %v1776_v11 = vpack.c.bf16 %v1769_v48, %v1768_v44  ;;  %v1770_v43 = vmax.f32 %v4644_v55, %v3613_v22  ;;  %v3651_v55 = vld [vmem:[%s5175_s4 + $0x40] sm:$0xff]   ;;  %v3658_v57 = vld [vmem:[%s5175_s4 + $0x18] sm:$0xff]  }
 0x37d   :  { %2448 = vmatpush1.bf16.msra.mxu1 %v3190_v21  ;;  %v3663_v21 = vld [vmem:[%s5175_s4 + $0x70] sm:$0xff]  }
 0x37e   :  { %2355 = vmatpush1.bf16.msra.mxu0 %v3188_v51  ;;  %2449 = vmatprep.subr.bf16.mxu1 %v3199_v18  ;;  %v1777_v10 = vpack.c.bf16 %v1771_v34, %v1770_v43  ;;  %v3664_v51 = vld [vmem:[%s5175_s4 + $0x30] sm:$0xff]  }
 0x37f   :  { %2356 = vmatprep.subr.bf16.mxu0 %v3197_v60 }
 0x380   :  { %2215 = vmatmul.mubr.bf16.gmra.mrb[32].mxu0 %v4742_v24  ;;  %2308 = vmatmul.mubr.bf16.gmra.mrb[36].mxu1 %v4742_v24 }
 0x381   :  { %2224 = vmatprep.mubr.bf16.mxu0 %v5188_v62  ;;  %2317 = vmatprep.mubr.bf16.mxu1 %v5188_v62 }
 0x382   :  { %2450 = vmatpush1.bf16.msra.mxu1 %v3198_v42  ;;  %2357 = vmatpush1.bf16.msra.mxu0 %v3196_v41 }
 0x383   :  { %2451 = vmatprep.subr.bf16.mxu1 %v3207_v39  ;;  %2358 = vmatprep.subr.bf16.mxu0 %v3205_v31 }
 0x386   :  { %2452 = vmatpush1.bf16.msra.mxu1 %v3206_v45  ;;  %2359 = vmatpush1.bf16.msra.mxu0 %v3204_v2 }
 0x387   :  { %2453 = vmatprep.subr.bf16.mxu1 %v3215_v47  ;;  %2360 = vmatprep.subr.bf16.mxu0 %v3213_v23 }
 0x388   :  { %2225 = vmatmul.mubr.bf16.gmra.mrb[36].mxu0 %v1775_v46  ;;  %2318 = vmatmul.mubr.bf16.gmra.mrb[40].mxu1 %v1775_v46 }
 0x389   :  { %2234 = vmatprep.mubr.bf16.mxu0 %v5188_v62  ;;  %2327 = vmatprep.mubr.bf16.mxu1 %v5188_v62 }
 0x38a   :  { %2454 = vmatpush1.bf16.msra.mxu1 %v3214_v3  ;;  %2361 = vmatpush1.bf16.msra.mxu0 %v3212_v20 }
 0x38b   :  { %2455 = vmatprep.subr.bf16.mxu1 %v3223_v37  ;;  %2362 = vmatprep.subr.bf16.mxu0 %v3221_v35 }
 0x38e   :  { %2456 = vmatpush1.bf16.msra.mxu1 %v3222_v12  ;;  %2363 = vmatpush1.bf16.msra.mxu0 %v3220_v7 }
 0x38f   :  { %3304 = vmatprep.subr.bf16.mxu0 %v3651_v55 }
 0x390   :  { %2235 = vmatmul.mubr.bf16.gmra.mrb[40].mxu0 %v1776_v11  ;;  %2328 = vmatmul.mubr.bf16.gmra.mrb[44].mxu1 %v1776_v11 }
 0x391   :  { %2244 = vmatprep.mubr.bf16.mxu0 %v5188_v62  ;;  %2337 = vmatprep.mubr.bf16.mxu1 %v5188_v62 }
 0x398   :  { %2245 = vmatmul.mubr.bf16.gmra.mrb[44].mxu0 %v1777_v10  ;;  %2338 = vmatmul.mubr.bf16.gmra.mrb[48].mxu1 %v1777_v10 }
 0x399   :  { %2380 = vmatprep.mubr.bf16.mxu0 %v5188_v62  ;;  %2473 = vmatprep.mubr.bf16.mxu1 %v5188_v62 }
 0x3a0   :  { %2381 = vmatmul.mubr.bf16.vlgmr.msra.gmra.mrb[48].mxu0 %v4675_v19  ;;  %2474 = vmatmul.mubr.bf16.vlgmr.msra.gmra.mrb[52].mxu1 %v4675_v19  ;;  %v3653_v19 = vld [vmem:[%s5175_s4 + $0x48] sm:$0xff]  }
 0x3a1   :  { %2390 = vmatprep.mubr.bf16.mxu0 %v5188_v62  ;;  %2483 = vmatprep.mubr.bf16.mxu1 %v5188_v62 }
 0x3a2   :  { %3305 = vmatpush3.bf16.msra.mxu0 %v3652_v50 }
 0x3a3   :  { %3306 = vmatprep.subr.bf16.mxu0 %v3653_v19 }
 0x3a8   :  { %2391 = vmatmul.mubr.bf16.gmra.mrb[52].mxu0 %v4710_v0  ;;  %2484 = vmatmul.mubr.bf16.gmra.mrb[56].mxu1 %v4710_v0  ;;  %v3655_v0 = vld [vmem:[%s5175_s4 + $0x50] sm:$0xff]  }
 0x3a9   :  { %2400 = vmatprep.mubr.bf16.mxu0 %v5188_v62  ;;  %2493 = vmatprep.mubr.bf16.mxu1 %v5188_v62 }
 0x3b0   :  { %2401 = vmatmul.mubr.bf16.gmra.mrb[56].mxu0 %v4742_v24  ;;  %2494 = vmatmul.mubr.bf16.gmra.mrb[60].mxu1 %v4742_v24 }
 0x3b1   :  { %2410 = vmatprep.mubr.bf16.mxu0 %v5188_v62  ;;  %2503 = vmatprep.mubr.bf16.mxu1 %v5188_v62 }
 0x3b8   :  { %2411 = vmatmul.mubr.bf16.gmra.mrb[60].mxu0 %v1775_v46  ;;  %2504 = vmatmul.mubr.bf16.gmra.mrb[64].mxu1 %v1775_v46 }
 0x3b9   :  { %2420 = vmatprep.mubr.bf16.mxu0 %v5188_v62  ;;  %2513 = vmatprep.mubr.bf16.mxu1 %v5188_v62 }
 0x3c0   :  { %2421 = vmatmul.mubr.bf16.gmra.mrb[64].mxu0 %v1776_v11  ;;  %2514 = vmatmul.mubr.bf16.gmra.mrb[68].mxu1 %v1776_v11 }
 0x3c1   :  { %2430 = vmatprep.mubr.bf16.mxu0 %v5188_v62  ;;  %2523 = vmatprep.mubr.bf16.mxu1 %v5188_v62  ;;  %v3654_v62 = vld [vmem:[%s5175_s4 + $0x8] sm:$0xff]  }
 0x3c2   :  { %3307 = vmatpush3.bf16.msra.mxu0 %v3654_v62 }
 0x3c3   :  { %3308 = vmatprep.subr.bf16.mxu0 %v3655_v0 }
 0x3c6   :  { %3309 = vmatpush3.bf16.msra.mxu0 %v3656_v36 }
 0x3c7   :  { %3310 = vmatprep.subr.bf16.mxu0 %v3657_v54 }
 0x3c8   :  { %2431 = vmatmul.mubr.bf16.gmra.mrb[68].mxu0 %v1777_v10  ;;  %2524 = vmatmul.mubr.bf16.gmra.mrb[72].mxu1 %v1777_v10 }
 0x3ca   :  { %3311 = vmatpush3.bf16.msra.mxu0 %v3658_v57 }
 0x3cb   :  { %3312 = vmatprep.subr.bf16.mxu0 %v3659_v26 }
 0x3ce   :  { %3313 = vmatpush3.bf16.msra.mxu0 %v3660_v63 }
 0x3cf   :  { %3314 = vmatprep.subr.bf16.mxu0 %v3661_v9 }
 0x3d2   :  { %3315 = vmatpush3.bf16.msra.mxu0 %v3662_v30 }
 0x3d3   :  { %3316 = vmatprep.subr.bf16.mxu0 %v3663_v21 }
 0x3d6   :  { %3317 = vmatpush3.bf16.msra.mxu0 %v3664_v51 }
 0x3d7   :  { %3318 = vmatprep.subr.bf16.mxu0 %v3665_v6 }
 0x3da   :  { %3319 = vmatpush3.bf16.msra.mxu0 %v3666_v25 }
 0x443   :  { %v2196_v18 = vpop.f32.mrb[24].mxu0  ;;  %v4848_v27 = vpop.f32.mrb[28].mxu1 }
 0x444   :  { %v2198_v60 = vpop.f32.mrb[25].mxu0  ;;  %v4850_v28 = vpop.f32.mrb[29].mxu1  ;;  %v2534_v33 = vrot.slane %v4848_v27, 4 }
 0x445   :  { %v2200_v16 = vpop.f32.mrb[26].mxu0  ;;  %v2293_v58 = vpop.f32.mrb[30].mxu1  ;;  %v2535_v13 = vrot.slane %v4850_v28, 4 }
 0x446   :  { %v2536_v42 = vrot.slane %v2293_v58, 4  ;;  %v2202_v24 = vpop.f32.mrb[27].mxu0  ;;  %v2295_v29 = vpop.f32.mrb[31].mxu1 }
 0x447   :  { %v2537_v41 = vrot.slane %v2295_v29, 4 }
 0x448   :  { %v2579_v39 = vsel %vm2558_vm7, %v2534_v33, %v2536_v42 }
 0x449   :  { %v4859_v31 = vadd.f32 %v2579_v39, %v2196_v18  ;;  %v2580_v5 = vsel %vm2558_vm7, %v2535_v13, %v2537_v41 }
 0x44a   :  { %v4865_v49 = vadd.f32 %v2580_v5, %v2198_v60 }
 0x44b   :  { %v2206_v8 = vpop.f32.mrb[28].mxu0  ;;  %v2299_v1 = vpop.f32.mrb[32].mxu1 }
 0x44c   :  { %v2538_v45 = vrot.slane %v2299_v1, 4  ;;  %v2208_v4 = vpop.f32.mrb[29].mxu0  ;;  %v2301_v32 = vpop.f32.mrb[33].mxu1 }
 0x44d   :  { %v2539_v2 = vrot.slane %v2301_v32, 4  ;;  %v2210_v53 = vpop.f32.mrb[30].mxu0  ;;  %v2303_v47 = vpop.f32.mrb[34].mxu1 }
 0x44e   :  { %v2540_v23 = vrot.slane %v2303_v47, 4  ;;  %v2212_v59 = vpop.f32.mrb[31].mxu0  ;;  %v2305_v14 = vpop.f32.mrb[35].mxu1  ;;  %v2577_v38 = vsel %vm2558_vm7, %v2536_v42, %v2538_v45 }
 0x44f   :  { %v2541_v17 = vrot.slane %v2305_v14, 4  ;;  %v4869_v3 = vadd.f32 %v2577_v38, %v2200_v16  ;;  %v2578_v46 = vsel %vm2558_vm7, %v2537_v41, %v2539_v2 }
 0x450   :  { %v4873_v52 = vadd.f32 %v2578_v46, %v2202_v24  ;;  %v2575_v61 = vsel %vm2558_vm7, %v2538_v45, %v2540_v23 }
 0x451   :  { %v4877_v20 = vadd.f32 %v2575_v61, %v2206_v8  ;;  %v2576_v37 = vsel %vm2558_vm7, %v2539_v2, %v2541_v17 }
 0x452   :  { %v4881_v35 = vadd.f32 %v2576_v37, %v2208_v4 }
 0x453   :  { %v2216_v12 = vpop.f32.mrb[32].mxu0  ;;  %v2309_v48 = vpop.f32.mrb[36].mxu1 }
 0x454   :  { %v2542_v44 = vrot.slane %v2309_v48, 4  ;;  %v2218_v7 = vpop.f32.mrb[33].mxu0  ;;  %v2311_v56 = vpop.f32.mrb[37].mxu1 }
 0x455   :  { %v2543_v11 = vrot.slane %v2311_v56, 4  ;;  %v2220_v40 = vpop.f32.mrb[34].mxu0  ;;  %v2313_v22 = vpop.f32.mrb[38].mxu1 }
 0x456   :  { %v2544_v34 = vrot.slane %v2313_v22, 4  ;;  %v2222_v43 = vpop.f32.mrb[35].mxu0  ;;  %v2315_v10 = vpop.f32.mrb[39].mxu1  ;;  %v2573_v55 = vsel %vm2558_vm7, %v2540_v23, %v2542_v44 }
 0x457   :  { %v2545_v50 = vrot.slane %v2315_v10, 4  ;;  %v4885_v19 = vadd.f32 %v2573_v55, %v2210_v53  ;;  %v2574_v62 = vsel %vm2558_vm7, %v2541_v17, %v2543_v11 }
 0x458   :  { %v4889_v0 = vadd.f32 %v2574_v62, %v2212_v59  ;;  %v2571_v36 = vsel %vm2558_vm7, %v2542_v44, %v2544_v34 }
 0x459   :  { %v4893_v54 = vadd.f32 %v2571_v36, %v2216_v12  ;;  %v2572_v57 = vsel %vm2558_vm7, %v2543_v11, %v2545_v50 }
 0x45a   :  { %v4897_v26 = vadd.f32 %v2572_v57, %v2218_v7 }
 0x45b   :  { %v2226_v63 = vpop.f32.mrb[36].mxu0  ;;  %v2319_v9 = vpop.f32.mrb[40].mxu1 }
 0x45c   :  { %v2546_v30 = vrot.slane %v2319_v9, 4  ;;  %v2228_v21 = vpop.f32.mrb[37].mxu0  ;;  %v2321_v51 = vpop.f32.mrb[41].mxu1 }
 0x45d   :  { %v2547_v6 = vrot.slane %v2321_v51, 4  ;;  %v2230_v25 = vpop.f32.mrb[38].mxu0  ;;  %v2323_v18 = vpop.f32.mrb[42].mxu1 }
 0x45e   :  { %v2548_v60 = vrot.slane %v2323_v18, 4  ;;  %v2232_v16 = vpop.f32.mrb[39].mxu0  ;;  %v2325_v58 = vpop.f32.mrb[43].mxu1  ;;  %v2569_v42 = vsel %vm2558_vm7, %v2544_v34, %v2546_v30 }
 0x45f   :  { %v2549_v24 = vrot.slane %v2325_v58, 4  ;;  %v4901_v29 = vadd.f32 %v2569_v42, %v2220_v40  ;;  %v2570_v41 = vsel %vm2558_vm7, %v2545_v50, %v2547_v6 }
 0x460   :  { %v4905_v39 = vadd.f32 %v2570_v41, %v2222_v43  ;;  %v2567_v5 = vsel %vm2558_vm7, %v2546_v30, %v2548_v60 }
 0x461   :  { %v4909_v8 = vadd.f32 %v2567_v5, %v2226_v63  ;;  %v2568_v1 = vsel %vm2558_vm7, %v2547_v6, %v2549_v24 }
 0x462   :  { %v4913_v45 = vadd.f32 %v2568_v1, %v2228_v21 }
 0x463   :  { %v2236_v4 = vpop.f32.mrb[40].mxu0  ;;  %v2329_v32 = vpop.f32.mrb[44].mxu1 }
 0x464   :  { %v2550_v2 = vrot.slane %v2329_v32, 4  ;;  %v2238_v53 = vpop.f32.mrb[41].mxu0  ;;  %v2331_v47 = vpop.f32.mrb[45].mxu1 }
 0x465   :  { %v2551_v23 = vrot.slane %v2331_v47, 4  ;;  %v2240_v59 = vpop.f32.mrb[42].mxu0  ;;  %v2333_v14 = vpop.f32.mrb[46].mxu1  ;;  %v2706_v47 = vsub.s32 0, %v3787_v15 }
 0x466   :  { %v2552_v38 = vrot.slane %v2333_v14, 4  ;;  %v2242_v17 = vpop.f32.mrb[43].mxu0  ;;  %v2335_v46 = vpop.f32.mrb[47].mxu1  ;;  %v2565_v61 = vsel %vm2558_vm7, %v2548_v60, %v2550_v2 }
 0x467   :  { %v2553_v37 = vrot.slane %v2335_v46, 4  ;;  %v4917_v12 = vadd.f32 %v2565_v61, %v2230_v25  ;;  %v2566_v48 = vsel %vm2558_vm7, %v2549_v24, %v2551_v23  ;;  %v2710_v46 = vsub.s32 1, %v3787_v15 }
 0x468   :  { %v4921_v44 = vadd.f32 %v2566_v48, %v2232_v16  ;;  %v2563_v7 = vsel %vm2558_vm7, %v2550_v2, %v2552_v38 }
 0x469   :  { %v4925_v56 = vadd.f32 %v2563_v7, %v2236_v4  ;;  %v2564_v11 = vsel %vm2558_vm7, %v2551_v23, %v2553_v37 }
 0x46a   :  { %v4929_v40 = vadd.f32 %v2564_v11, %v2238_v53 }
 0x46b   :  { %v2246_v22 = vpop.f32.mrb[44].mxu0  ;;  %v2339_v34 = vpop.f32.mrb[48].mxu1 }
 0x46c   :  { %v2554_v43 = vrot.slane %v2339_v34, 4  ;;  %v2248_v10 = vpop.f32.mrb[45].mxu0  ;;  %v2341_v55 = vpop.f32.mrb[49].mxu1  ;;  %v28_v34 = vld [vmem:[%s5176_s5 + $0x4] sm:$0x3] }
 0x46d   :  { %v2555_v50 = vrot.slane %v2341_v55, 4  ;;  %v2250_v62 = vpop.f32.mrb[46].mxu0  ;;  %v2343_v36 = vpop.f32.mrb[50].mxu1 }
 0x46e   :  { %v2556_v57 = vrot.slane %v2343_v36, 4  ;;  %v2252_v63 = vpop.f32.mrb[47].mxu0  ;;  %v2345_v9 = vpop.f32.mrb[51].mxu1  ;;  %v2561_v30 = vsel %vm2558_vm7, %v2552_v38, %v2554_v43  ;;  %v4984_v36 = vrot.slane %v28_v34, %v2706_v47 }
 0x46f   :  { %v2557_v21 = vrot.slane %v2345_v9, 4  ;;  %v4933_v51 = vadd.f32 %v2561_v30, %v2240_v59  ;;  %v2562_v6 = vsel %vm2558_vm7, %v2553_v37, %v2555_v50 }
 0x470   :  { %v2581_v25 = vsel %vm2558_vm7, %v2556_v57, %v2534_v33  ;;  %v4941_v18 = vadd.f32 %v2562_v6, %v2242_v17  ;;  %v2559_v60 = vsel %vm2558_vm7, %v2554_v43, %v2556_v57 }
 0x471   :  { %v2605_v16 = vadd.f32 %v2581_v25, %v2250_v62  ;;  %v2582_v58 = vsel %vm2558_vm7, %v2557_v21, %v2535_v13  ;;  %v4949_v42 = vadd.f32 %v2559_v60, %v2246_v22  ;;  %v2560_v24 = vsel %vm2558_vm7, %v2555_v50, %v2557_v21  ;;  %v27_v13 = vld [vmem:[%s5176_s5 + $0x2] sm:$0x3] }
 0x472   :  { %v2606_v27 = vadd.f32 %v2582_v58, %v2252_v63  ;;  %v4953_v41 = vadd.f32 %v2560_v24, %v2248_v10  ;;  %v4972_v22 = vrot.slane %v27_v13, %v2706_v47  ;;  %v4990_v60 = vrot.slane %v28_v34, %v2710_v46 }
 0x473   :  { %v2382_v33 = vpop.f32.mrb[48].mxu0  ;;  %v4955_v5 = vpop.f32.mrb[52].mxu1 }
 0x474   :  { %v2629_v1 = vadd.f32 %v2605_v16, %v2382_v33  ;;  %v2384_v4 = vpop.f32.mrb[49].mxu0  ;;  %v4957_v32 = vpop.f32.mrb[53].mxu1  ;;  %v2631_v23 = vrot.slane %v4955_v5, 4 }
 0x475   :  { %v2630_v2 = vadd.f32 %v2606_v27, %v2384_v4  ;;  %v2386_v28 = vpop.f32.mrb[50].mxu0  ;;  %v2479_v53 = vpop.f32.mrb[54].mxu1  ;;  %v2632_v61 = vrot.slane %v4957_v32, 4 }
 0x476   :  { %v2607_v59 = vadd.f32 %v4859_v31, %v2386_v28  ;;  %v2633_v14 = vrot.slane %v2479_v53, 4  ;;  %v2388_v38 = vpop.f32.mrb[51].mxu0  ;;  %v2481_v17 = vpop.f32.mrb[55].mxu1 }
 0x477   :  { %v2608_v37 = vadd.f32 %v4865_v49, %v2388_v38  ;;  %v2634_v48 = vrot.slane %v2481_v17, 4  ;;  %v4981_v49 = vrot.slane %v27_v13, %v2710_v46 }
 0x478   :  { %v2675_v7 = vsel %vm2558_vm7, %v2631_v23, %v2633_v14 }
 0x479   :  { %v2701_v11 = vadd.f32 %v2675_v7, %v2629_v1  ;;  %v2676_v31 = vsel %vm2558_vm7, %v2632_v61, %v2634_v48 }
 0x47a   :  { %v2702_v43 = vadd.f32 %v2676_v31, %v2630_v2 }
 0x47b   :  { %v2392_v10 = vpop.f32.mrb[52].mxu0  ;;  %v2485_v55 = vpop.f32.mrb[56].mxu1  ;;  %v4987_v9 = vadd.f32 %v4972_v22, %v2701_v11 }
 0x47c   :  { %v2609_v50 = vadd.f32 %v4869_v3, %v2392_v10  ;;  %v2635_v62 = vrot.slane %v2485_v55, 4  ;;  %v2394_v57 = vpop.f32.mrb[53].mxu0  ;;  %v2487_v63 = vpop.f32.mrb[57].mxu1  ;;  %v4993_v16 = vadd.f32 %v4981_v49, %v2702_v43 }
 0x47d   :  { %v2610_v30 = vadd.f32 %v4873_v52, %v2394_v57  ;;  %v2636_v21 = vrot.slane %v2487_v63, 4  ;;  %v2396_v6 = vpop.f32.mrb[54].mxu0  ;;  %v2489_v25 = vpop.f32.mrb[58].mxu1  ;;  %vm2760_vm9 = vcmp.ge.f32.partialorder %v4987_v9, 0.0 }
 0x47e   :  { %v2673_v3 = vsel %vm2558_vm7, %v2633_v14, %v2635_v62  ;;  %v2611_v58 = vadd.f32 %v4877_v20, %v2396_v6  ;;  %v2637_v24 = vrot.slane %v2489_v25, 4  ;;  %v2398_v27 = vpop.f32.mrb[55].mxu0  ;;  %v2491_v33 = vpop.f32.mrb[59].mxu1  ;;  %vm2761_vm1 = vcmp.ge.f32.partialorder %v4993_v16, 0.0 }
 0x47f   :  { %v2679_v1 = vadd.f32 %v2673_v3, %v2607_v59  ;;  %v2674_v52 = vsel %vm2558_vm7, %v2634_v48, %v2636_v21  ;;  %v2612_v4 = vadd.f32 %v4881_v35, %v2398_v27  ;;  %v2638_v2 = vrot.slane %v2491_v33, 4 }
 0x480   :  { %v2680_v28 = vadd.f32 %v2674_v52, %v2608_v37  ;;  %v2671_v13 = vsel %vm2558_vm7, %v2635_v62, %v2637_v24  ;;  %v5009_v59 = vmul.f32 %v4984_v36, %v4987_v9  ;;  %v5015_v48 = vmul.f32 %v4990_v60, %v4993_v16 }
 0x481   :  { %v2714_v53 = vadd.f32 %v4972_v22, %v2679_v1  ;;  %v2681_v47 = vadd.f32 %v2671_v13, %v2609_v50  ;;  %v2672_v20 = vsel %vm2558_vm7, %v2636_v21, %v2638_v2 }
 0x482   :  { %v2715_v14 = vadd.f32 %v4981_v49, %v2680_v28  ;;  %v2682_v38 = vadd.f32 %v2672_v20, %v2610_v30 }
 0x483   :  { %vm2738_vm10 = vcmp.ge.f32.partialorder %v2714_v53, 0.0  ;;  %v2773_v35 = vmul.f32 %v4984_v36, %v2714_v53  ;;  %v2716_v17 = vadd.f32 %v4972_v22, %v2681_v47  ;;  %v2402_v46 = vpop.f32.mrb[56].mxu0  ;;  %v2495_v37 = vpop.f32.mrb[60].mxu1 }
 0x484   :  { %v2717_v7 = vadd.f32 %v4981_v49, %v2682_v38  ;;  %v2613_v11 = vadd.f32 %v4885_v19, %v2402_v46  ;;  %v2639_v31 = vrot.slane %v2495_v37, 4  ;;  %v2404_v34 = vpop.f32.mrb[57].mxu0  ;;  %v2497_v43 = vpop.f32.mrb[61].mxu1  ;;  %vm2739_vm11 = vcmp.ge.f32.partialorder %v2715_v14, 0.0 }
 0x485   :  { %v2797_v10 = vsel %vm2738_vm10, %v2714_v53, %v2773_v35  ;;  %vm2740_vm12 = vcmp.ge.f32.partialorder %v2716_v17, 0.0  ;;  %v2775_v55 = vmul.f32 %v4984_v36, %v2716_v17  ;;  %v2614_v50 = vadd.f32 %v4889_v0, %v2404_v34  ;;  %v2406_v62 = vpop.f32.mrb[58].mxu0  ;;  %v2499_v57 = vpop.f32.mrb[62].mxu1 }
 0x486   :  { %v2669_v63 = vsel %vm2558_vm7, %v2637_v24, %v2639_v31  ;;  %v2640_v30 = vrot.slane %v2497_v43, 4  ;;  %v2615_v21 = vadd.f32 %v4893_v54, %v2406_v62  ;;  %v2641_v6 = vrot.slane %v2499_v57, 4  ;;  %v2408_v19 = vpop.f32.mrb[59].mxu0  ;;  %v2501_v25 = vpop.f32.mrb[63].mxu1 }
 0x487   :  { %v2799_v3 = vsel %vm2740_vm12, %v2716_v17, %v2775_v55  ;;  %v2683_v27 = vadd.f32 %v2669_v63, %v2611_v58  ;;  %v2616_v33 = vadd.f32 %v4897_v26, %v2408_v19  ;;  %v2642_v1 = vrot.slane %v2501_v25, 4 }
 0x488   :  { %v2670_v52 = vsel %vm2558_vm7, %v2638_v2, %v2640_v30  ;;  %v2667_v0 = vsel %vm2558_vm7, %v2639_v31, %v2641_v6  ;;  %vm2741_vm13 = vcmp.ge.f32.partialorder %v2717_v7, 0.0  ;;  %v2774_v24 = vmul.f32 %v4990_v60, %v2715_v14 }
 0x489   :  { %v2718_v28 = vadd.f32 %v4972_v22, %v2683_v27  ;;  %v2684_v54 = vadd.f32 %v2670_v52, %v2612_v4  ;;  %v2685_v13 = vadd.f32 %v2667_v0, %v2613_v11  ;;  %v2668_v53 = vsel %vm2558_vm7, %v2640_v30, %v2642_v1 }
 0x48a   :  { %v2686_v58 = vadd.f32 %v2668_v53, %v2614_v50  ;;  %v2776_v26 = vmul.f32 %v4990_v60, %v2717_v7  ;;  %v2798_v47 = vsel %vm2739_vm11, %v2715_v14, %v2774_v24  ;;  %v2821_v20 = vpack.c.bf16 %v2799_v3, %v2797_v10 }
 0x48b   :  { %v2719_v2 = vadd.f32 %v4981_v49, %v2684_v54  ;;  %v2720_v38 = vadd.f32 %v4972_v22, %v2685_v13  ;;  %v2412_v35 = vpop.f32.mrb[60].mxu0  ;;  %v2505_v17 = vpop.f32.mrb[64].mxu1  ;;  %vm2742_vm14 = vcmp.ge.f32.partialorder %v2718_v28, 0.0  ;;  %v2777_v46 = vmul.f32 %v4984_v36, %v2718_v28 }
 0x48c   :  { %v2721_v4 = vadd.f32 %v4981_v49, %v2686_v58  ;;  %v2617_v37 = vadd.f32 %v4901_v29, %v2412_v35  ;;  %v2643_v11 = vrot.slane %v2505_v17, 4  ;;  %v2800_v31 = vsel %vm2741_vm13, %v2717_v7, %v2776_v26  ;;  %v2414_v34 = vpop.f32.mrb[61].mxu0  ;;  %v2507_v43 = vpop.f32.mrb[65].mxu1 }
 0x48d   :  { %v2822_v14 = vpack.c.bf16 %v2800_v31, %v2798_v47  ;;  %v2618_v10 = vadd.f32 %v4905_v39, %v2414_v34  ;;  %v2644_v55 = vrot.slane %v2507_v43, 4  ;;  %v2416_v50 = vpop.f32.mrb[62].mxu0  ;;  %v2509_v62 = vpop.f32.mrb[66].mxu1  ;;  %vm2743_vm15 = vcmp.ge.f32.partialorder %v2719_v2, 0.0 }
 0x48e   :  { %v2665_v57 = vsel %vm2558_vm7, %v2641_v6, %v2643_v11  ;;  %v2619_v63 = vadd.f32 %v4909_v8, %v2416_v50  ;;  %v2645_v30 = vrot.slane %v2509_v62, 4  ;;  %v2418_v19 = vpop.f32.mrb[63].mxu0  ;;  %v2511_v29 = vpop.f32.mrb[67].mxu1  ;;  %vm2745_vm0 = vcmp.ge.f32.partialorder %v2721_v4, 0.0 }
 0x48f   :  { %v2687_v7 = vadd.f32 %v2665_v57, %v2615_v21  ;;  %2999 = vmatprep.mubr.bf16.mxu0 %v2822_v14  ;;  %v2666_v39 = vsel %vm2558_vm7, %v2642_v1, %v2644_v55  ;;  %v2620_v25 = vadd.f32 %v4913_v45, %v2418_v19  ;;  %v2646_v3 = vrot.slane %v2511_v29, 4 }
 0x490   :  { %v2688_v27 = vadd.f32 %v2666_v39, %v2616_v33  ;;  %3000 = vmatmul.mubr.bf16.vlgmr.msra.gmra.mrb[72].mxu0 %v2821_v20  ;;  %v2663_v6 = vsel %vm2558_vm7, %v2643_v11, %v2645_v30  ;;  %v2778_v8 = vmul.f32 %v4990_v60, %v2719_v2  ;;  %v2780_v52 = vmul.f32 %v4990_v60, %v2721_v4 }
 0x491   :  { %v5054_v0 = vadd.f32 %v4972_v22, %v2687_v7  ;;  %v2689_v21 = vadd.f32 %v2663_v6, %v2617_v37  ;;  %v2664_v24 = vsel %vm2558_vm7, %v2644_v55, %v2646_v3  ;;  %vm2744_vm2 = vcmp.ge.f32.partialorder %v2720_v38, 0.0 }
 0x492   :  { %v2723_v45 = vadd.f32 %v4981_v49, %v2688_v27  ;;  %v2690_v1 = vadd.f32 %v2664_v24, %v2618_v10  ;;  %v2802_v33 = vsel %vm2743_vm15, %v2719_v2, %v2778_v8  ;;  %v2804_v54 = vsel %vm2745_vm0, %v2721_v4, %v2780_v52 }
 0x493   :  { %v5062_v13 = vadd.f32 %v4972_v22, %v2689_v21  ;;  %v2422_v53 = vpop.f32.mrb[64].mxu0  ;;  %v2515_v58 = vpop.f32.mrb[68].mxu1  ;;  %v2824_v26 = vpack.c.bf16 %v2804_v54, %v2802_v33  ;;  %v2779_v47 = vmul.f32 %v4984_v36, %v2720_v38  ;;  %v2801_v20 = vsel %vm2742_vm14, %v2718_v28, %v2777_v46 }
 0x494   :  { %v2725_v35 = vadd.f32 %v4981_v49, %v2690_v1  ;;  %v2621_v17 = vadd.f32 %v4917_v12, %v2422_v53  ;;  %v2647_v37 = vrot.slane %v2515_v58, 4  ;;  %v2424_v11 = vpop.f32.mrb[65].mxu0  ;;  %v2517_v31 = vpop.f32.mrb[69].mxu1  ;;  %vm2747_vm3 = vcmp.ge.f32.partialorder %v2723_v45, 0.0 }
 0x495   :  { %3006 = vmatprep.mubr.bf16.mxu0 %v2824_v26  ;;  %v2622_v2 = vadd.f32 %v4921_v44, %v2424_v11  ;;  %v2648_v4 = vrot.slane %v2517_v31, 4  ;;  %v2803_v34 = vsel %vm2744_vm2, %v2720_v38, %v2779_v47  ;;  %v2426_v43 = vpop.f32.mrb[66].mxu0  ;;  %v2519_v14 = vpop.f32.mrb[70].mxu1  ;;  %v2782_v10 = vmul.f32 %v4990_v60, %v2723_v45 }
 0x496   :  { %v2661_v28 = vsel %vm2558_vm7, %v2645_v30, %v2647_v37  ;;  %v2823_v46 = vpack.c.bf16 %v2803_v34, %v2801_v20  ;;  %v2623_v12 = vadd.f32 %v4925_v56, %v2426_v43  ;;  %v2649_v55 = vrot.slane %v2519_v14, 4  ;;  %v2428_v50 = vpop.f32.mrb[67].mxu0  ;;  %v2521_v62 = vpop.f32.mrb[71].mxu1 }
 0x497   :  { %v2691_v57 = vadd.f32 %v2661_v28, %v2619_v63  ;;  %v2662_v44 = vsel %vm2558_vm7, %v2646_v3, %v2648_v4  ;;  %v2624_v19 = vadd.f32 %v4929_v40, %v2428_v50  ;;  %v2650_v38 = vrot.slane %v2521_v62, 4 }
 0x498   :  { %v2692_v29 = vadd.f32 %v2662_v44, %v2620_v25  ;;  %3007 = vmatmul.mubr.bf16.gmra.mrb[76].mxu0 %v2823_v46  ;;  %v2659_v7 = vsel %vm2558_vm7, %v2647_v37, %v2649_v55  ;;  %vm2749_vm4 = vcmp.ge.f32.partialorder %v2725_v35, 0.0  ;;  %v2784_v30 = vmul.f32 %v4990_v60, %v2725_v35 }
 0x499   :  { %v5081_v56 = vadd.f32 %v4972_v22, %v2691_v57  ;;  %v2693_v39 = vadd.f32 %v2659_v7, %v2621_v17  ;;  %v2660_v63 = vsel %vm2558_vm7, %v2648_v4, %v2650_v38  ;;  %v5089_v40 = vsel %vm2761_vm1, %v4993_v16, %v5015_v48 }
 0x49a   :  { %v2694_v25 = vadd.f32 %v2660_v63, %v2622_v2  ;;  %v2806_v3 = vsel %vm2747_vm3, %v2723_v45, %v2782_v10  ;;  %v2808_v27 = vsel %vm2749_vm4, %v2725_v35, %v2784_v30  ;;  %vm2746_vm5 = vcmp.ge.f32.partialorder %v5054_v0, 0.0 }
 0x49b   :  { %v2727_v6 = vadd.f32 %v4981_v49, %v2692_v29  ;;  %v2432_v8 = vpop.f32.mrb[68].mxu0  ;;  %v2525_v52 = vpop.f32.mrb[72].mxu1  ;;  %v2826_v21 = vpack.c.bf16 %v2808_v27, %v2806_v3  ;;  %vm2748_vm6 = vcmp.ge.f32.partialorder %v5062_v13, 0.0  ;;  %v2781_v24 = vmul.f32 %v4984_v36, %v5054_v0 }
 0x49c   :  { %v2728_v1 = vadd.f32 %v4972_v22, %v2693_v39  ;;  %v2625_v16 = vadd.f32 %v4933_v51, %v2432_v8  ;;  %v2651_v48 = vrot.slane %v2525_v52, 4  ;;  %v2434_v33 = vpop.f32.mrb[69].mxu0  ;;  %v2527_v45 = vpop.f32.mrb[73].mxu1  ;;  %v2783_v54 = vmul.f32 %v4984_v36, %v5062_v13 }
 0x49d   :  { %v2729_v53 = vadd.f32 %v4981_v49, %v2694_v25  ;;  %3012 = vmatprep.mubr.bf16.mxu0 %v2826_v21  ;;  %v2626_v58 = vadd.f32 %v4941_v18, %v2434_v33  ;;  %v2652_v26 = vrot.slane %v2527_v45, 4  ;;  %v2805_v47 = vsel %vm2746_vm5, %v5054_v0, %v2781_v24  ;;  %v2436_v20 = vpop.f32.mrb[70].mxu0  ;;  %v2529_v35 = vpop.f32.mrb[74].mxu1 }
 0x49e   :  { %v2657_v51 = vsel %vm2558_vm7, %v2649_v55, %v2651_v48  ;;  %v2807_v17 = vsel %vm2748_vm6, %v5062_v13, %v2783_v54  ;;  %v2627_v37 = vadd.f32 %v4949_v42, %v2436_v20  ;;  %v2653_v11 = vrot.slane %v2529_v35, 4  ;;  %v2438_v31 = vpop.f32.mrb[71].mxu0  ;;  %v2531_v2 = vpop.f32.mrb[75].mxu1 }
 0x49f   :  { %v2695_v18 = vadd.f32 %v2657_v51, %v2623_v12  ;;  %v2658_v4 = vsel %vm2558_vm7, %v2650_v38, %v2652_v26  ;;  %v2825_v34 = vpack.c.bf16 %v2807_v17, %v2805_v47  ;;  %v2628_v0 = vadd.f32 %v4953_v41, %v2438_v31 }
 0x4a0   :  { %v2696_v43 = vadd.f32 %v2658_v4, %v2624_v19  ;;  %v2655_v14 = vsel %vm2558_vm7, %v2651_v48, %v2653_v11  ;;  %v2677_v13 = vsel %vm2558_vm7, %v2653_v11, %v2631_v23  ;;  %v2654_v42 = vrot.slane %v2531_v2, 4 }
 0x4a1   :  { %v2730_v10 = vadd.f32 %v4972_v22, %v2695_v18  ;;  %3013 = vmatmul.mubr.bf16.gmra.mrb[80].mxu0 %v2825_v34  ;;  %v2697_v28 = vadd.f32 %v2655_v14, %v2625_v16  ;;  %v2699_v46 = vadd.f32 %v2677_v13, %v2627_v37  ;;  %vm2751_vm8 = vcmp.ge.f32.partialorder %v2727_v6, 0.0 }
 0x4a2   :  { %v2731_v41 = vadd.f32 %v4981_v49, %v2696_v43  ;;  %v2656_v12 = vsel %vm2558_vm7, %v2652_v26, %v2654_v42  ;;  %v2678_v5 = vsel %vm2558_vm7, %v2654_v42, %v2632_v61  ;;  %v2786_v23 = vmul.f32 %v4990_v60, %v2727_v6 }
 0x4a3   :  { %v2732_v55 = vadd.f32 %v4972_v22, %v2697_v28  ;;  %v2698_v50 = vadd.f32 %v2656_v12, %v2626_v58  ;;  %v2700_v62 = vadd.f32 %v2678_v5, %v2628_v0  ;;  %vm2753_vm10 = vcmp.ge.f32.partialorder %v2729_v53, 0.0 }
 0x4a4   :  { %v2734_v57 = vadd.f32 %v4972_v22, %v2699_v46  ;;  %v2788_v44 = vmul.f32 %v4990_v60, %v2729_v53  ;;  %vm2750_vm11 = vcmp.ge.f32.partialorder %v5081_v56, 0.0  ;;  %vm2752_vm12 = vcmp.ge.f32.partialorder %v2728_v1, 0.0 }
 0x4a5   :  { %v2733_v19 = vadd.f32 %v4981_v49, %v2698_v50  ;;  %v2735_v32 = vadd.f32 %v4981_v49, %v2700_v62  ;;  %v2785_v15 = vmul.f32 %v4984_v36, %v5081_v56  ;;  %v2787_v61 = vmul.f32 %v4984_v36, %v2728_v1 }
 0x4a6   :  { %v2810_v38 = vsel %vm2751_vm8, %v2727_v6, %v2786_v23  ;;  %v2812_v29 = vsel %vm2753_vm10, %v2729_v53, %v2788_v44  ;;  %vm2755_vm7 = vcmp.ge.f32.partialorder %v2731_v41, 0.0  ;;  %v2790_v22 = vmul.f32 %v4990_v60, %v2731_v41 }
 0x4a7   :  { %v2828_v7 = vpack.c.bf16 %v2812_v29, %v2810_v38  ;;  %v2809_v30 = vsel %vm2750_vm11, %v5081_v56, %v2785_v15  ;;  %v2811_v39 = vsel %vm2752_vm12, %v2728_v1, %v2787_v61  ;;  %vm2757_vm13 = vcmp.ge.f32.partialorder %v2733_v19, 0.0 }
 0x4a8   :  { %v2827_v63 = vpack.c.bf16 %v2811_v39, %v2809_v30  ;;  %v2792_v25 = vmul.f32 %v4990_v60, %v2733_v19  ;;  %vm2754_vm14 = vcmp.ge.f32.partialorder %v2730_v10, 0.0  ;;  %vm2756_vm15 = vcmp.ge.f32.partialorder %v2732_v55, 0.0 }
 0x4a9   :  { %3018 = vmatprep.mubr.bf16.mxu0 %v2828_v7  ;;  %v2789_v49 = vmul.f32 %v4984_v36, %v2730_v10  ;;  %v2791_v3 = vmul.f32 %v4984_v36, %v2732_v55  ;;  %vm2759_vm0 = vcmp.ge.f32.partialorder %v2735_v32, 0.0  ;;  %v2794_v27 = vmul.f32 %v4990_v60, %v2735_v32 }
 0x4aa   :  { %3019 = vmatmul.mubr.bf16.gmra.mrb[84].mxu0 %v2827_v63  ;;  %v2814_v6 = vsel %vm2755_vm7, %v2731_v41, %v2790_v22  ;;  %v2816_v8 = vsel %vm2757_vm13, %v2733_v19, %v2792_v25  ;;  %vm2758_vm1 = vcmp.ge.f32.partialorder %v2734_v57, 0.0  ;;  %v2793_v56 = vmul.f32 %v4984_v36, %v2734_v57  ;;  %v3224_v36 = vld [vmem:[%s5176_s5 + $0x6] ss:$0 sm:$0xff]  ;;  %s3047_s5 = sshll.u32 %s3695_s15, 4  ;;  %s3048_s5 = int_to_ptr.vmem [resolvable:$true] %s3047_s5 }
 0x4ab   :  { %v2830_v52 = vpack.c.bf16 %v2816_v8, %v2814_v6  ;;  %v2813_v21 = vsel %vm2754_vm14, %v2730_v10, %v2789_v49  ;;  %v2815_v24 = vsel %vm2756_vm15, %v2732_v55, %v2791_v3  ;;  %v2818_v1 = vsel %vm2759_vm0, %v2735_v32, %v2794_v27  ;;  %s3667_s16 = scalar_lea.vmem %s3048_s5, 32  ;;  %p3672_p1 = scmp.lt.s32.totalorder %s3048_s5, %s3048_s5 }
 0x4ac   :  { %v2829_v16 = vpack.c.bf16 %v2815_v24, %v2813_v21  ;;  %v2832_v48 = vpack.c.bf16 %v5089_v40, %v2818_v1  ;;  %v2817_v33 = vsel %vm2758_vm1, %v2734_v57, %v2793_v56  ;;  %v2819_v60 = vsel %vm2760_vm9, %v4987_v9, %v5009_v59  ;;  %p3668_p0 = scmp.ne.s32.totalorder %s3048_s5, %s3667_s16  ;;  %p3673_p2 = scmp.lt.s32.totalorder %s3667_s16, %s3667_s16 }
 0x4ad   :  { %3025 = vmatprep.mubr.bf16.mxu0 %v2830_v52  ;;  %v2831_v45 = vpack.c.bf16 %v2819_v60, %v2817_v33  ;;  %vm3038_vm2 = vcmask 73728  }
 0x4ae   :  { %p3674_p3 = por %p3673_p2, %p3672_p1 }
 0x4b0   :  { %p3675_p4 = pnand %p3674_p3, %p3668_p0 }
 0x4b2   :  { %3026 = vmatmul.mubr.bf16.gmra.mrb[88].mxu0 %v2829_v16 }
 0x4b3   :  { %3031 = vmatprep.mubr.bf16.mxu0 %v2832_v48 }
 0x4ba   :  { %3032 = vmatmul.mubr.bf16.gmra.mrb[92].mxu0 %v2831_v45 }
 0x563   :  { %v3320_v54 = vpop.f32.mrb[72].mxu0 }
 0x564   :  { %v3321_v53 = vpop.f32.mrb[73].mxu0 }
 0x565   :  { %v3322_v58 = vadd.f32 %v3321_v53, %v3320_v54  ;;  %v3323_v26 = vpop.f32.mrb[74].mxu0 }
 0x566   :  { %v3324_v40 = vpop.f32.mrb[75].mxu0 }
 0x567   :  { %v3002_v47 = vadd.f32 %v3322_v58, %v3224_v36 }
 0x569   :  { %3039 = vst.msk [vmem:[#allocation2] sm:$0x1] %vm3038_vm2, %v3002_v47 }
 0x56b   :  { %v3326_v20 = vpop.f32.mrb[76].mxu0 }
 0x56c   :  { %v3327_v9 = vpop.f32.mrb[77].mxu0 }
 0x56d   :  { %v3329_v59 = vpop.f32.mrb[78].mxu0 }
 0x56e   :  { %v3330_v35 = vpop.f32.mrb[79].mxu0 }
 0x574   :  { %v3332_v51 = vpop.f32.mrb[80].mxu0 }
 0x575   :  { %v3333_v17 = vpop.f32.mrb[81].mxu0 }
 0x576   :  { %v3335_v37 = vpop.f32.mrb[82].mxu0 }
 0x577   :  { %v3336_v11 = vpop.f32.mrb[83].mxu0 }
 0x57d   :  { %v3338_v31 = vpop.f32.mrb[84].mxu0 }
 0x57e   :  { %v3339_v2 = vpop.f32.mrb[85].mxu0 }
 0x57f   :  { %v3340_v18 = vadd.f32 %v3339_v2, %v3338_v31  ;;  %v3341_v4 = vpop.f32.mrb[86].mxu0 }
 0x580   :  { %v3342_v34 = vpop.f32.mrb[87].mxu0 }
 0x581   :  { %v3021_v0 = vadd.f32 %v3340_v18, %v3224_v36 }
 0x583   :  { %3040 = vst.msk [vmem:[#allocation2 + $0x1] sm:$0x1] %vm3038_vm2, %v3021_v0 }
 0x584   :  { %3678 = shalt.err (!%p3675_p4)
}
 0x585   :  { %s3679_s19 = scalar_lea.hbm %s5177_s6, 32 }
 0x586   :  { %p3680_p5 = scmp.ne.s32.totalorder %s5177_s6, %s3679_s19  ;;  %p3683_p6 = scmp.lt.u32.totalorder %s3679_s19, %s5177_s6 }
 0x588   :  { %p3685_p7 = pnand %p3683_p6, %p3680_p5 }
 0x58a   :  { %3688 = shalt.err (!%p3685_p7)
}
 0x58b   :  { %3050 = dma.vmem_to_hbm [thread:$0]  %s3048_s5, 32, %s5177_s6, [#allocation3]   ;;  %v3344_v43 = vpop.f32.mrb[88].mxu0 }
 0x58c   :  { %v3345_v14 = vpop.f32.mrb[89].mxu0 }
 0x58d   :  { %v3347_v13 = vpop.f32.mrb[90].mxu0 }
 0x58e   :  { %v3348_v42 = vpop.f32.mrb[91].mxu0 }
 0x58f   :  { %v3350_v10 = vpop.f32.mrb[92].mxu0 }
 0x590   :  { %v3351_v28 = vpop.f32.mrb[93].mxu0 }
 0x591   :  { %v3353_v46 = vpop.f32.mrb[94].mxu0 }
 0x592   :  { %v3354_v41 = vpop.f32.mrb[95].mxu0 }
 0x593   :  { %3689 = dma.done.wait [#allocation3], 32  }
 0x594   :  { %3690 = vsyncadd [#allocation3], 4294967264 }
 0x595   :  { %3054 = vsyncpa [#allocation3], 1 }

</bundles_post_ra>
